<compile_context>
chip_gen: v7x
topology: tpu7x:2x2x1
jax: 0.10.0
libtpu: 0.0.40
codegen_flags: <defaults>
</compile_context>

<pallas_src>
import jax
import jax.numpy as jnp
from jax import lax
from jax.experimental import pallas as pl
from jax.experimental.pallas import tpu as pltpu


def _round_up(a, m):
    return (a + m - 1) // m * m


def _make_lstm_kernel(*, hp, tt, n_sub, seq_len, ragged):
    """Builds the recurrence kernel for a static tile configuration.

    Kernel refs:
      xg_ref : (tt, tb, 4*Hp) bf16   precomputed x@W_x + b, [g|i|f|o] stacked
      wh_ref : (Hp, 4*Hp)     bf16   hidden->gate weights
      wp_ref : (Hp, Cp)       f32    output projection
      bp_ref : (1, Cp)        f32    output bias
      out_ref: (tb, Cp)       f32    logits (written on the last time chunk)
      h_scr, c_scr: (tb, Hp)  f32    state, persists across time chunks
    """

    def kernel(xg_ref, wh_ref, wp_ref, bp_ref, out_ref, h_scr, c_scr):
        t_idx = pl.program_id(1)                 # time-chunk index (inner axis)
        tb = h_scr.shape[0]
        tb_sub = tb // n_sub

        @pl.when(t_idx == 0)
        def _init():                             # reset state once per batch tile
            h_scr[...] = jnp.zeros_like(h_scr)
            c_scr[...] = jnp.zeros_like(c_scr)

        wh = wh_ref[...]                         # bf16 (Hp, 4Hp), VMEM-resident

        # Load carried state once per chunk; inside the chunk h/c live in
        # vregs (fori_loop carries), so each step's h_new feeds the next
        # step's matmul directly — no per-step VMEM store/reload.
        h0 = h_scr[...]
        c0 = c_scr[...]
        hs = tuple(h0[k * tb_sub:(k + 1) * tb_sub] for k in range(n_sub))
        cs = tuple(c0[k * tb_sub:(k + 1) * tb_sub] for k in range(n_sub))

        def step(s, carry):
            hs, cs = carry
            xg_s = xg_ref[s]                     # (tb, 4Hp) bf16
            new_hs, new_cs = [], []
            # n_sub independent dependence chains: sub-tile k's h@W_h (MXU)
            # overlaps the other sub-tile's tanh/sigmoid chain (EUP/VPU).
            for k in range(n_sub):
                xk = xg_s[k * tb_sub:(k + 1) * tb_sub].astype(jnp.float32)
                gates = xk + jnp.dot(hs[k].astype(jnp.bfloat16), wh,
                                     preferred_element_type=jnp.float32)
                g = jnp.tanh(gates[:, :hp])
                # sigmoid(x) = 0.5*(tanh(0.5x)+1); one fused tanh over the
                # contiguous, lane-aligned i|f|o slab.
                ifo = 0.5 * (jnp.tanh(0.5 * gates[:, hp:]) + 1.0)
                i = ifo[:, 0 * hp:1 * hp]
                f = ifo[:, 1 * hp:2 * hp]
                o = ifo[:, 2 * hp:3 * hp]
                c_new = g * i + cs[k] * f
                h_new = jnp.tanh(c_new) * o
                if ragged:
                    # Zero-padded tail steps of the last chunk: keep prev state.
                    valid = (t_idx * tt + s) < seq_len
                    h_new = jnp.where(valid, h_new, hs[k])
                    c_new = jnp.where(valid, c_new, cs[k])
                new_hs.append(h_new)
                new_cs.append(c_new)
            return tuple(new_hs), tuple(new_cs)

        hs, cs = lax.fori_loop(0, tt, step, (hs, cs), unroll=True)

        h_all = jnp.concatenate(hs, axis=0)
        c_all = jnp.concatenate(cs, axis=0)
        h_scr[...] = h_all                       # once per chunk, not per step
        c_scr[...] = c_all

        @pl.when(t_idx == pl.num_programs(1) - 1)
        def _final():                            # epilogue projection in f32
            out_ref[...] = (jnp.dot(h_all, wp_ref[...],
                                    preferred_element_type=jnp.float32)
                            + bp_ref[...]).astype(out_ref.dtype)

    return kernel


def _pad_cols_per_gate(w, h, hp):
    """Re-stack [g|i|f|o] columns so each gate block is padded from h to hp."""
    parts = []
    for k in range(4):
        blk = w[:, k * h:(k + 1) * h]
        parts.append(jnp.pad(blk, ((0, 0), (0, hp - h))))
    return jnp.concatenate(parts, axis=1)


def lstm_forward(x, params, *, t_chunk=16, b_tile=256, min_batch_tiles=1):
    """x: (batch, seq, input_dim) float32. Returns logits (batch, num_classes)."""
    wx, wh, bias = params["W_x"], params["W_h"], params["b"]
    wproj, bproj = params["W_p"], params["b_p"]

    batch, seq, input_dim = x.shape
    hidden = wh.shape[0]
    num_classes = wproj.shape[1]

    # --- vreg / MXU-friendly padded sizes -----------------------------------
    hp = _round_up(hidden, 128)          # gate slices on 128-lane boundaries
    cp = _round_up(num_classes, 128)     # lane-dense output store
    b8 = _round_up(batch, 8)             # sublane-aligned batch

    tb = min(b8, _round_up(b_tile, 8))
    # On v7x (2 TensorCores) pass min_batch_tiles=2 so the "parallel" batch
    # axis spans both cores; on v5e/v6e keep the single largest tile.
    if min_batch_tiles > 1 and b8 >= 16:
        tb = min(tb, _round_up(-(-b8 // min_batch_tiles), 8))
    bpad = _round_up(b8, tb)

    # 2-way sub-tile interleave inside the recurrence when the batch tile
    # splits into two sublane-aligned halves.
    n_sub = 2 if tb % 16 == 0 else 1

    # Fixed time chunk + ragged-tail masking (no divisor fallback).
    tt = max(1, min(seq, t_chunk))
    # Cap tt so the double-buffered bf16 xg tile stays <= ~8 MiB; the whole
    # working set then fits easily in v7x's 64 MiB VMEM (v5e/v6e: 128 MiB).
    while tt > 1 and 2 * (tt * tb * 4 * hp * 2) > 8 * 1024 * 1024:
        tt = (tt + 1) // 2
    n_chunks = -(-seq // tt)
    t_pad = n_chunks * tt
    ragged = (seq % tt) != 0

    # --- parameter padding (zero padding is exactly semantics-preserving) ---
    wx_pad = _pad_cols_per_gate(wx, hidden, hp)                                # (D, 4Hp) f32
    bias_pad = _pad_cols_per_gate(bias.reshape(1, 4 * hidden), hidden, hp)     # (1, 4Hp) f32
    wh_pad = _pad_cols_per_gate(wh, hidden, hp)
    wh_pad = jnp.pad(wh_pad, ((0, hp - hidden), (0, 0))).astype(jnp.bfloat16)  # (Hp, 4Hp)
    wproj_pad = jnp.pad(wproj, ((0, hp - hidden), (0, cp - num_classes)))      # (Hp, Cp) f32
    bproj_pad = jnp.pad(bproj.reshape(1, num_classes),
                        ((0, 0), (0, cp - num_classes)))                       # (1, Cp) f32

    # --- hoisted input projection: one big XLA GEMM over all (time, batch) --
    # Streamed into the kernel as lane-dense bf16 (last dim 4Hp), halving DMA
    # bytes; padded time steps get xg = bias (finite) and are masked in-kernel.
    x_pad = jnp.pad(x, ((0, bpad - batch), (0, t_pad - seq), (0, 0)))
    x_tm = jnp.transpose(x_pad, (1, 0, 2))                                     # (Tp, Bp, D)
    xg = jnp.einsum("tbd,dg->tbg", x_tm, wx_pad,
                    preferred_element_type=jnp.float32) + bias_pad
    xg = xg.astype(jnp.bfloat16)                                               # (Tp, Bp, 4Hp)

    grid = (bpad // tb, n_chunks)        # (parallel batch tiles, sequential time)
    kernel = _make_lstm_kernel(hp=hp, tt=tt, n_sub=n_sub, seq_len=seq, ragged=ragged)

    # NOTE: the weight BlockSpecs have constant index_maps so they are never
    # re-DMA'd across grid steps; single-buffering them (pipeline_mode=
    # pl.Buffered(1)) would shave a bit more VMEM if tt/tb are pushed further.
    out = pl.pallas_call(
        kernel,
        out_shape=jax.ShapeDtypeStruct((bpad, cp), jnp.float32),
        grid_spec=pltpu.PrefetchScalarGridSpec(
            num_scalar_prefetch=0,
            grid=grid,
            in_specs=[
                pl.BlockSpec((tt, tb, 4 * hp), lambda bi, ti: (ti, bi, 0)),
                pl.BlockSpec((hp, 4 * hp), lambda bi, ti: (0, 0)),
                pl.BlockSpec((hp, cp), lambda bi, ti: (0, 0)),
                pl.BlockSpec((1, cp), lambda bi, ti: (0, 0)),
            ],
            out_specs=pl.BlockSpec((tb, cp), lambda bi, ti: (bi, 0)),
            scratch_shapes=[
                pltpu.VMEM((tb, hp), jnp.float32),   # h state (across chunks)
                pltpu.VMEM((tb, hp), jnp.float32),   # c state (across chunks)
            ],
        ),
        compiler_params=pltpu.CompilerParams(
            dimension_semantics=("parallel", "arbitrary"),
            # ~48 MiB keeps a safe margin under v7x's 64 MiB physical VMEM
            # while giving v5e/v6e (128 MiB) room for larger tt/tb configs.
            vmem_limit_bytes=48 * 1024 * 1024,
        ),
    )(xg, wh_pad, wproj_pad, bproj_pad)

    return out[:batch, :num_classes]


def init_params(key, input_dim, hidden, num_classes):
    """Deterministic synthetic params matching the PyTorch module's shapes.

    Per-gate (W_*x, W_*h, b_*) triples are stacked along the output dim [g,i,f,o].
    """
    ks = jax.random.split(key, 6)
    scale = 0.01
    wx = scale * jax.random.normal(ks[0], (input_dim, 4 * hidden), jnp.float32)
    wh = scale * jax.random.normal(ks[1], (hidden, 4 * hidden), jnp.float32)
    b = scale * jax.random.normal(ks[2], (4 * hidden,), jnp.float32)
    wp = scale * jax.random.normal(ks[3], (hidden, num_classes), jnp.float32)
    bp = scale * jax.random.normal(ks[4], (num_classes,), jnp.float32)
    return {"W_x": wx, "W_h": wh, "b": b, "W_p": wp, "b_p": bp}


def lstm_reference(x, params):
    """Pure-JAX f32 reference matching the PyTorch forward exactly."""
    wx, wh, b, wp, bp = (params["W_x"], params["W_h"], params["b"],
                         params["W_p"], params["b_p"])
    batch = x.shape[0]
    hidden = wh.shape[0]
    h = jnp.zeros((batch, hidden), jnp.float32)
    c = jnp.zeros((batch, hidden), jnp.float32)
    for step in range(x.shape[1]):
        x_ = x[:, step, :]
        gates = x_ @ wx + h @ wh + b
        g = jnp.tanh(gates[:, 0 * hidden:1 * hidden])
        i = jax.nn.sigmoid(gates[:, 1 * hidden:2 * hidden])
        f = jax.nn.sigmoid(gates[:, 2 * hidden:3 * hidden])
        o = jax.nn.sigmoid(gates[:, 3 * hidden:4 * hidden])
        c = g * i + c * f
        h = jnp.tanh(c) * o
    return h @ wp + bp


if __name__ == "__main__":
    # Small shapes consistent with the module's forward.
    batch_size = 16
    seq_length = 10      # not a multiple of the time chunk -> ragged-tail path
    input_dim = 16
    num_hidden = 32
    num_classes = 10

    key = jax.random.PRNGKey(0)
    k_params, k_x = jax.random.split(key)
    params = init_params(k_params, input_dim, num_hidden, num_classes)
    x = jax.random.normal(k_x, (batch_size, seq_length, input_dim), jnp.float32)

    ref = lstm_reference(x, params)

    # Config 1: 3 time chunks (4+4+2 with masked tail), one batch tile with
    # two interleaved sub-tiles (register-carried h/c across unrolled steps).
    out = jax.block_until_ready(lstm_forward(x, params, t_chunk=4))
    assert out.shape == (batch_size, num_classes)
    # bf16 matmul inputs / bf16 streamed xg (f32 accumulation) => looser tol.
    assert jnp.allclose(out, ref, atol=2e-3, rtol=2e-2), (
        f"max abs diff {jnp.max(jnp.abs(out - ref))}")

    # Config 2: single time chunk, two batch tiles (parallel batch grid axis).
    out2 = jax.block_until_ready(lstm_forward(x, params, t_chunk=16, b_tile=8))
    assert jnp.allclose(out2, ref, atol=2e-3, rtol=2e-2), (
        f"max abs diff {jnp.max(jnp.abs(out2 - ref))}")

    print("KERNEL_OK")
</pallas_src>

<mosaic_0001>
module attributes {stable_mosaic.version = 11 : i64} {
  func.func @kernel(%arg0: i32, %arg1: i32, %arg2: memref<4x16x512xbf16, #tpu.memory_space<vmem>>, %arg3: memref<128x512xbf16, #tpu.memory_space<vmem>>, %arg4: memref<128x128xf32, #tpu.memory_space<vmem>>, %arg5: memref<1x128xf32, #tpu.memory_space<vmem>>, %arg6: memref<16x128xf32, #tpu.memory_space<vmem>>, %arg7: memref<16x128xf32, #tpu.memory_space<vmem>>, %arg8: memref<16x128xf32, #tpu.memory_space<vmem>>) attributes {dimension_semantics = [#tpu.dimension_semantics<parallel>, #tpu.dimension_semantics<arbitrary>], iteration_bounds = array<i64: 1, 3>, scalar_prefetch = 0 : i64, scratch_operands = 2 : i64, tpu.core_type = #tpu.core_type<tc>, window_params = [{transform_indices = @transform_0, window_bounds = array<i64: 4, 16, 512>}, {pipeline_mode = #tpu.pipeline_mode<synchronous>, transform_indices = @transform_1, window_bounds = array<i64: 128, 512>}, {pipeline_mode = #tpu.pipeline_mode<synchronous>, transform_indices = @transform_2, window_bounds = array<i64: 128, 128>}, {pipeline_mode = #tpu.pipeline_mode<synchronous>, transform_indices = @transform_3, window_bounds = array<i64: 1, 128>}, {transform_indices = @transform_4, window_bounds = array<i64: 16, 128>}]} {
    %c0_i32 = arith.constant 0 : i32
    %0 = arith.cmpi eq, %arg1, %c0_i32 : i32
    %1 = arith.extui %0 : i1 to i32
    %c0_i32_0 = arith.constant 0 : i32
    %2 = arith.cmpi ne, %1, %c0_i32_0 : i32
    scf.if %2 {
      %cst_67 = arith.constant 0.000000e+00 : f32
      %253 = vector.broadcast %cst_67 : f32 to vector<16x128xf32>
      %c0_68 = arith.constant 0 : index
      %c0_69 = arith.constant 0 : index
      %254 = vector.load %arg7[%c0_68, %c0_69] : memref<16x128xf32, #tpu.memory_space<vmem>>, vector<16x128xf32>
      tpu.vector_store %arg7[%c0_68, %c0_69], %253 {strides = array<i32>} : memref<16x128xf32, #tpu.memory_space<vmem>>, vector<16x128xf32>,
      %cst_70 = arith.constant 0.000000e+00 : f32
      %255 = vector.broadcast %cst_70 : f32 to vector<16x128xf32>
      %c0_71 = arith.constant 0 : index
      %c0_72 = arith.constant 0 : index
      %256 = vector.load %arg8[%c0_71, %c0_72] : memref<16x128xf32, #tpu.memory_space<vmem>>, vector<16x128xf32>
      tpu.vector_store %arg8[%c0_71, %c0_72], %255 {strides = array<i32>} : memref<16x128xf32, #tpu.memory_space<vmem>>, vector<16x128xf32>,
    } else {
    }
    %c0 = arith.constant 0 : index
    %c0_1 = arith.constant 0 : index
    %3 = vector.load %arg3[%c0, %c0_1] : memref<128x512xbf16, #tpu.memory_space<vmem>>, vector<128x512xbf16>
    %c0_2 = arith.constant 0 : index
    %c0_3 = arith.constant 0 : index
    %4 = vector.load %arg7[%c0_2, %c0_3] : memref<16x128xf32, #tpu.memory_space<vmem>>, vector<16x128xf32>
    %c0_4 = arith.constant 0 : index
    %c0_5 = arith.constant 0 : index
    %5 = vector.load %arg8[%c0_4, %c0_5] : memref<16x128xf32, #tpu.memory_space<vmem>>, vector<16x128xf32>
    %6 = vector.extract_strided_slice %4 {offsets = [0, 0], sizes = [8, 128], strides = [1, 1]} : vector<16x128xf32> to vector<8x128xf32>
    %7 = vector.extract_strided_slice %4 {offsets = [8, 0], sizes = [8, 128], strides = [1, 1]} : vector<16x128xf32> to vector<8x128xf32>
    %8 = vector.extract_strided_slice %5 {offsets = [0, 0], sizes = [8, 128], strides = [1, 1]} : vector<16x128xf32> to vector<8x128xf32>
    %9 = vector.extract_strided_slice %5 {offsets = [8, 0], sizes = [8, 128], strides = [1, 1]} : vector<16x128xf32> to vector<8x128xf32>
    %c0_i32_6 = arith.constant 0 : i32
    %10 = arith.index_cast %c0_i32_6 : i32 to index
    %c0_7 = arith.constant 0 : index
    %c0_8 = arith.constant 0 : index
    %11 = vector.load %arg2[%10, %c0_7, %c0_8] : memref<4x16x512xbf16, #tpu.memory_space<vmem>>, vector<1x16x512xbf16>
    %12 = vector.shape_cast %11 : vector<1x16x512xbf16> to vector<16x512xbf16>
    %13 = vector.extract_strided_slice %12 {offsets = [0, 0], sizes = [8, 512], strides = [1, 1]} : vector<16x512xbf16> to vector<8x512xbf16>
    %14 = arith.extf %13 : vector<8x512xbf16> to vector<8x512xf32>
    %15 = arith.truncf %6 : vector<8x128xf32> to vector<8x128xbf16>
    %cst = arith.constant dense<0.000000e+00> : vector<8x512xf32>
    %16 = tpu.matmul %15, %3, %cst {dimension_numbers = #tpu.dot_dimension_numbers<[1], [0], [0], [1], [0, 0, 1, 1], [], []>} : vector<8x128xbf16>, vector<128x512xbf16>, vector<8x512xf32> -> vector<8x512xf32>
    %17 = arith.addf %14, %16 : vector<8x512xf32>
    %18 = vector.extract_strided_slice %17 {offsets = [0, 0], sizes = [8, 128], strides = [1, 1]} : vector<8x512xf32> to vector<8x128xf32>
    %19 = math.tanh %18 : vector<8x128xf32>
    %20 = vector.extract_strided_slice %17 {offsets = [0, 128], sizes = [8, 384], strides = [1, 1]} : vector<8x512xf32> to vector<8x384xf32>
    %cst_9 = arith.constant 5.000000e-01 : f32
    %21 = vector.broadcast %cst_9 : f32 to vector<8x384xf32>
    %22 = arith.mulf %21, %20 : vector<8x384xf32>
    %23 = math.tanh %22 : vector<8x384xf32>
    %cst_10 = arith.constant 1.000000e+00 : f32
    %24 = vector.broadcast %cst_10 : f32 to vector<8x384xf32>
    %25 = arith.addf %23, %24 : vector<8x384xf32>
    %cst_11 = arith.constant 5.000000e-01 : f32
    %26 = vector.broadcast %cst_11 : f32 to vector<8x384xf32>
    %27 = arith.mulf %26, %25 : vector<8x384xf32>
    %28 = vector.extract_strided_slice %27 {offsets = [0, 0], sizes = [8, 128], strides = [1, 1]} : vector<8x384xf32> to vector<8x128xf32>
    %29 = vector.extract_strided_slice %27 {offsets = [0, 128], sizes = [8, 128], strides = [1, 1]} : vector<8x384xf32> to vector<8x128xf32>
    %30 = vector.extract_strided_slice %27 {offsets = [0, 256], sizes = [8, 128], strides = [1, 1]} : vector<8x384xf32> to vector<8x128xf32>
    %31 = arith.mulf %19, %28 : vector<8x128xf32>
    %32 = arith.mulf %8, %29 : vector<8x128xf32>
    %33 = arith.addf %31, %32 : vector<8x128xf32>
    %34 = math.tanh %33 : vector<8x128xf32>
    %35 = arith.mulf %34, %30 : vector<8x128xf32>
    %c4_i32 = arith.constant 4 : i32
    %36 = arith.muli %arg1, %c4_i32 : i32
    %37 = arith.addi %36, %c0_i32_6 : i32
    %c10_i32 = arith.constant 10 : i32
    %38 = arith.cmpi slt, %37, %c10_i32 : i32
    %39 = arith.select %38, %35, %6 : vector<8x128xf32>
    %40 = arith.select %38, %33, %8 : vector<8x128xf32>
    %41 = vector.extract_strided_slice %12 {offsets = [8, 0], sizes = [8, 512], strides = [1, 1]} : vector<16x512xbf16> to vector<8x512xbf16>
    %42 = arith.extf %41 : vector<8x512xbf16> to vector<8x512xf32>
    %43 = arith.truncf %7 : vector<8x128xf32> to vector<8x128xbf16>
    %cst_12 = arith.constant dense<0.000000e+00> : vector<8x512xf32>
    %44 = tpu.matmul %43, %3, %cst_12 {dimension_numbers = #tpu.dot_dimension_numbers<[1], [0], [0], [1], [0, 0, 1, 1], [], []>} : vector<8x128xbf16>, vector<128x512xbf16>, vector<8x512xf32> -> vector<8x512xf32>
    %45 = arith.addf %42, %44 : vector<8x512xf32>
    %46 = vector.extract_strided_slice %45 {offsets = [0, 0], sizes = [8, 128], strides = [1, 1]} : vector<8x512xf32> to vector<8x128xf32>
    %47 = math.tanh %46 : vector<8x128xf32>
    %48 = vector.extract_strided_slice %45 {offsets = [0, 128], sizes = [8, 384], strides = [1, 1]} : vector<8x512xf32> to vector<8x384xf32>
    %cst_13 = arith.constant 5.000000e-01 : f32
    %49 = vector.broadcast %cst_13 : f32 to vector<8x384xf32>
    %50 = arith.mulf %49, %48 : vector<8x384xf32>
    %51 = math.tanh %50 : vector<8x384xf32>
    %cst_14 = arith.constant 1.000000e+00 : f32
    %52 = vector.broadcast %cst_14 : f32 to vector<8x384xf32>
    %53 = arith.addf %51, %52 : vector<8x384xf32>
    %cst_15 = arith.constant 5.000000e-01 : f32
    %54 = vector.broadcast %cst_15 : f32 to vector<8x384xf32>
    %55 = arith.mulf %54, %53 : vector<8x384xf32>
    %56 = vector.extract_strided_slice %55 {offsets = [0, 0], sizes = [8, 128], strides = [1, 1]} : vector<8x384xf32> to vector<8x128xf32>
    %57 = vector.extract_strided_slice %55 {offsets = [0, 128], sizes = [8, 128], strides = [1, 1]} : vector<8x384xf32> to vector<8x128xf32>
    %58 = vector.extract_strided_slice %55 {offsets = [0, 256], sizes = [8, 128], strides = [1, 1]} : vector<8x384xf32> to vector<8x128xf32>
    %59 = arith.mulf %47, %56 : vector<8x128xf32>
    %60 = arith.mulf %9, %57 : vector<8x128xf32>
    %61 = arith.addf %59, %60 : vector<8x128xf32>
    %62 = math.tanh %61 : vector<8x128xf32>
    %63 = arith.mulf %62, %58 : vector<8x128xf32>
    %c4_i32_16 = arith.constant 4 : i32
    %64 = arith.muli %arg1, %c4_i32_16 : i32
    %65 = arith.addi %64, %c0_i32_6 : i32
    %c10_i32_17 = arith.constant 10 : i32
    %66 = arith.cmpi slt, %65, %c10_i32_17 : i32
    %67 = arith.select %66, %63, %7 : vector<8x128xf32>
    %68 = arith.select %66, %61, %9 : vector<8x128xf32>
    %c1_i32 = arith.constant 1 : i32
    %69 = arith.index_cast %c1_i32 : i32 to index
    %c0_18 = arith.constant 0 : index
    %c0_19 = arith.constant 0 : index
    %70 = vector.load %arg2[%69, %c0_18, %c0_19] : memref<4x16x512xbf16, #tpu.memory_space<vmem>>, vector<1x16x512xbf16>
    %71 = vector.shape_cast %70 : vector<1x16x512xbf16> to vector<16x512xbf16>
    %72 = vector.extract_strided_slice %71 {offsets = [0, 0], sizes = [8, 512], strides = [1, 1]} : vector<16x512xbf16> to vector<8x512xbf16>
    %73 = arith.extf %72 : vector<8x512xbf16> to vector<8x512xf32>
    %74 = arith.truncf %39 : vector<8x128xf32> to vector<8x128xbf16>
    %cst_20 = arith.constant dense<0.000000e+00> : vector<8x512xf32>
    %75 = tpu.matmul %74, %3, %cst_20 {dimension_numbers = #tpu.dot_dimension_numbers<[1], [0], [0], [1], [0, 0, 1, 1], [], []>} : vector<8x128xbf16>, vector<128x512xbf16>, vector<8x512xf32> -> vector<8x512xf32>
    %76 = arith.addf %73, %75 : vector<8x512xf32>
    %77 = vector.extract_strided_slice %76 {offsets = [0, 0], sizes = [8, 128], strides = [1, 1]} : vector<8x512xf32> to vector<8x128xf32>
    %78 = math.tanh %77 : vector<8x128xf32>
    %79 = vector.extract_strided_slice %76 {offsets = [0, 128], sizes = [8, 384], strides = [1, 1]} : vector<8x512xf32> to vector<8x384xf32>
    %cst_21 = arith.constant 5.000000e-01 : f32
    %80 = vector.broadcast %cst_21 : f32 to vector<8x384xf32>
    %81 = arith.mulf %80, %79 : vector<8x384xf32>
    %82 = math.tanh %81 : vector<8x384xf32>
    %cst_22 = arith.constant 1.000000e+00 : f32
    %83 = vector.broadcast %cst_22 : f32 to vector<8x384xf32>
    %84 = arith.addf %82, %83 : vector<8x384xf32>
    %cst_23 = arith.constant 5.000000e-01 : f32
    %85 = vector.broadcast %cst_23 : f32 to vector<8x384xf32>
    %86 = arith.mulf %85, %84 : vector<8x384xf32>
    %87 = vector.extract_strided_slice %86 {offsets = [0, 0], sizes = [8, 128], strides = [1, 1]} : vector<8x384xf32> to vector<8x128xf32>
    %88 = vector.extract_strided_slice %86 {offsets = [0, 128], sizes = [8, 128], strides = [1, 1]} : vector<8x384xf32> to vector<8x128xf32>
    %89 = vector.extract_strided_slice %86 {offsets = [0, 256], sizes = [8, 128], strides = [1, 1]} : vector<8x384xf32> to vector<8x128xf32>
    %90 = arith.mulf %78, %87 : vector<8x128xf32>
    %91 = arith.mulf %40, %88 : vector<8x128xf32>
    %92 = arith.addf %90, %91 : vector<8x128xf32>
    %93 = math.tanh %92 : vector<8x128xf32>
    %94 = arith.mulf %93, %89 : vector<8x128xf32>
    %c4_i32_24 = arith.constant 4 : i32
    %95 = arith.muli %arg1, %c4_i32_24 : i32
    %96 = arith.addi %95, %c1_i32 : i32
    %c10_i32_25 = arith.constant 10 : i32
    %97 = arith.cmpi slt, %96, %c10_i32_25 : i32
    %98 = arith.select %97, %94, %39 : vector<8x128xf32>
    %99 = arith.select %97, %92, %40 : vector<8x128xf32>
    %100 = vector.extract_strided_slice %71 {offsets = [8, 0], sizes = [8, 512], strides = [1, 1]} : vector<16x512xbf16> to vector<8x512xbf16>
    %101 = arith.extf %100 : vector<8x512xbf16> to vector<8x512xf32>
    %102 = arith.truncf %67 : vector<8x128xf32> to vector<8x128xbf16>
    %cst_26 = arith.constant dense<0.000000e+00> : vector<8x512xf32>
    %103 = tpu.matmul %102, %3, %cst_26 {dimension_numbers = #tpu.dot_dimension_numbers<[1], [0], [0], [1], [0, 0, 1, 1], [], []>} : vector<8x128xbf16>, vector<128x512xbf16>, vector<8x512xf32> -> vector<8x512xf32>
    %104 = arith.addf %101, %103 : vector<8x512xf32>
    %105 = vector.extract_strided_slice %104 {offsets = [0, 0], sizes = [8, 128], strides = [1, 1]} : vector<8x512xf32> to vector<8x128xf32>
    %106 = math.tanh %105 : vector<8x128xf32>
    %107 = vector.extract_strided_slice %104 {offsets = [0, 128], sizes = [8, 384], strides = [1, 1]} : vector<8x512xf32> to vector<8x384xf32>
    %cst_27 = arith.constant 5.000000e-01 : f32
    %108 = vector.broadcast %cst_27 : f32 to vector<8x384xf32>
    %109 = arith.mulf %108, %107 : vector<8x384xf32>
    %110 = math.tanh %109 : vector<8x384xf32>
    %cst_28 = arith.constant 1.000000e+00 : f32
    %111 = vector.broadcast %cst_28 : f32 to vector<8x384xf32>
    %112 = arith.addf %110, %111 : vector<8x384xf32>
    %cst_29 = arith.constant 5.000000e-01 : f32
    %113 = vector.broadcast %cst_29 : f32 to vector<8x384xf32>
    %114 = arith.mulf %113, %112 : vector<8x384xf32>
    %115 = vector.extract_strided_slice %114 {offsets = [0, 0], sizes = [8, 128], strides = [1, 1]} : vector<8x384xf32> to vector<8x128xf32>
    %116 = vector.extract_strided_slice %114 {offsets = [0, 128], sizes = [8, 128], strides = [1, 1]} : vector<8x384xf32> to vector<8x128xf32>
    %117 = vector.extract_strided_slice %114 {offsets = [0, 256], sizes = [8, 128], strides = [1, 1]} : vector<8x384xf32> to vector<8x128xf32>
    %118 = arith.mulf %106, %115 : vector<8x128xf32>
    %119 = arith.mulf %68, %116 : vector<8x128xf32>
    %120 = arith.addf %118, %119 : vector<8x128xf32>
    %121 = math.tanh %120 : vector<8x128xf32>
    %122 = arith.mulf %121, %117 : vector<8x128xf32>
    %c4_i32_30 = arith.constant 4 : i32
    %123 = arith.muli %arg1, %c4_i32_30 : i32
    %124 = arith.addi %123, %c1_i32 : i32
    %c10_i32_31 = arith.constant 10 : i32
    %125 = arith.cmpi slt, %124, %c10_i32_31 : i32
    %126 = arith.select %125, %122, %67 : vector<8x128xf32>
    %127 = arith.select %125, %120, %68 : vector<8x128xf32>
    %c2_i32 = arith.constant 2 : i32
    %128 = arith.index_cast %c2_i32 : i32 to index
    %c0_32 = arith.constant 0 : index
    %c0_33 = arith.constant 0 : index
    %129 = vector.load %arg2[%128, %c0_32, %c0_33] : memref<4x16x512xbf16, #tpu.memory_space<vmem>>, vector<1x16x512xbf16>
    %130 = vector.shape_cast %129 : vector<1x16x512xbf16> to vector<16x512xbf16>
    %131 = vector.extract_strided_slice %130 {offsets = [0, 0], sizes = [8, 512], strides = [1, 1]} : vector<16x512xbf16> to vector<8x512xbf16>
    %132 = arith.extf %131 : vector<8x512xbf16> to vector<8x512xf32>
    %133 = arith.truncf %98 : vector<8x128xf32> to vector<8x128xbf16>
    %cst_34 = arith.constant dense<0.000000e+00> : vector<8x512xf32>
    %134 = tpu.matmul %133, %3, %cst_34 {dimension_numbers = #tpu.dot_dimension_numbers<[1], [0], [0], [1], [0, 0, 1, 1], [], []>} : vector<8x128xbf16>, vector<128x512xbf16>, vector<8x512xf32> -> vector<8x512xf32>
    %135 = arith.addf %132, %134 : vector<8x512xf32>
    %136 = vector.extract_strided_slice %135 {offsets = [0, 0], sizes = [8, 128], strides = [1, 1]} : vector<8x512xf32> to vector<8x128xf32>
    %137 = math.tanh %136 : vector<8x128xf32>
    %138 = vector.extract_strided_slice %135 {offsets = [0, 128], sizes = [8, 384], strides = [1, 1]} : vector<8x512xf32> to vector<8x384xf32>
    %cst_35 = arith.constant 5.000000e-01 : f32
    %139 = vector.broadcast %cst_35 : f32 to vector<8x384xf32>
    %140 = arith.mulf %139, %138 : vector<8x384xf32>
    %141 = math.tanh %140 : vector<8x384xf32>
    %cst_36 = arith.constant 1.000000e+00 : f32
    %142 = vector.broadcast %cst_36 : f32 to vector<8x384xf32>
    %143 = arith.addf %141, %142 : vector<8x384xf32>
    %cst_37 = arith.constant 5.000000e-01 : f32
    %144 = vector.broadcast %cst_37 : f32 to vector<8x384xf32>
    %145 = arith.mulf %144, %143 : vector<8x384xf32>
    %146 = vector.extract_strided_slice %145 {offsets = [0, 0], sizes = [8, 128], strides = [1, 1]} : vector<8x384xf32> to vector<8x128xf32>
    %147 = vector.extract_strided_slice %145 {offsets = [0, 128], sizes = [8, 128], strides = [1, 1]} : vector<8x384xf32> to vector<8x128xf32>
    %148 = vector.extract_strided_slice %145 {offsets = [0, 256], sizes = [8, 128], strides = [1, 1]} : vector<8x384xf32> to vector<8x128xf32>
    %149 = arith.mulf %137, %146 : vector<8x128xf32>
    %150 = arith.mulf %99, %147 : vector<8x128xf32>
    %151 = arith.addf %149, %150 : vector<8x128xf32>
    %152 = math.tanh %151 : vector<8x128xf32>
    %153 = arith.mulf %152, %148 : vector<8x128xf32>
    %c4_i32_38 = arith.constant 4 : i32
    %154 = arith.muli %arg1, %c4_i32_38 : i32
    %155 = arith.addi %154, %c2_i32 : i32
    %c10_i32_39 = arith.constant 10 : i32
    %156 = arith.cmpi slt, %155, %c10_i32_39 : i32
    %157 = arith.select %156, %153, %98 : vector<8x128xf32>
    %158 = arith.select %156, %151, %99 : vector<8x128xf32>
    %159 = vector.extract_strided_slice %130 {offsets = [8, 0], sizes = [8, 512], strides = [1, 1]} : vector<16x512xbf16> to vector<8x512xbf16>
    %160 = arith.extf %159 : vector<8x512xbf16> to vector<8x512xf32>
    %161 = arith.truncf %126 : vector<8x128xf32> to vector<8x128xbf16>
    %cst_40 = arith.constant dense<0.000000e+00> : vector<8x512xf32>
    %162 = tpu.matmul %161, %3, %cst_40 {dimension_numbers = #tpu.dot_dimension_numbers<[1], [0], [0], [1], [0, 0, 1, 1], [], []>} : vector<8x128xbf16>, vector<128x512xbf16>, vector<8x512xf32> -> vector<8x512xf32>
    %163 = arith.addf %160, %162 : vector<8x512xf32>
    %164 = vector.extract_strided_slice %163 {offsets = [0, 0], sizes = [8, 128], strides = [1, 1]} : vector<8x512xf32> to vector<8x128xf32>
    %165 = math.tanh %164 : vector<8x128xf32>
    %166 = vector.extract_strided_slice %163 {offsets = [0, 128], sizes = [8, 384], strides = [1, 1]} : vector<8x512xf32> to vector<8x384xf32>
    %cst_41 = arith.constant 5.000000e-01 : f32
    %167 = vector.broadcast %cst_41 : f32 to vector<8x384xf32>
    %168 = arith.mulf %167, %166 : vector<8x384xf32>
    %169 = math.tanh %168 : vector<8x384xf32>
    %cst_42 = arith.constant 1.000000e+00 : f32
    %170 = vector.broadcast %cst_42 : f32 to vector<8x384xf32>
    %171 = arith.addf %169, %170 : vector<8x384xf32>
    %cst_43 = arith.constant 5.000000e-01 : f32
    %172 = vector.broadcast %cst_43 : f32 to vector<8x384xf32>
    %173 = arith.mulf %172, %171 : vector<8x384xf32>
    %174 = vector.extract_strided_slice %173 {offsets = [0, 0], sizes = [8, 128], strides = [1, 1]} : vector<8x384xf32> to vector<8x128xf32>
    %175 = vector.extract_strided_slice %173 {offsets = [0, 128], sizes = [8, 128], strides = [1, 1]} : vector<8x384xf32> to vector<8x128xf32>
    %176 = vector.extract_strided_slice %173 {offsets = [0, 256], sizes = [8, 128], strides = [1, 1]} : vector<8x384xf32> to vector<8x128xf32>
    %177 = arith.mulf %165, %174 : vector<8x128xf32>
    %178 = arith.mulf %127, %175 : vector<8x128xf32>
    %179 = arith.addf %177, %178 : vector<8x128xf32>
    %180 = math.tanh %179 : vector<8x128xf32>
    %181 = arith.mulf %180, %176 : vector<8x128xf32>
    %c4_i32_44 = arith.constant 4 : i32
    %182 = arith.muli %arg1, %c4_i32_44 : i32
    %183 = arith.addi %182, %c2_i32 : i32
    %c10_i32_45 = arith.constant 10 : i32
    %184 = arith.cmpi slt, %183, %c10_i32_45 : i32
    %185 = arith.select %184, %181, %126 : vector<8x128xf32>
    %186 = arith.select %184, %179, %127 : vector<8x128xf32>
    %c3_i32 = arith.constant 3 : i32
    %187 = arith.index_cast %c3_i32 : i32 to index
    %c0_46 = arith.constant 0 : index
    %c0_47 = arith.constant 0 : index
    %188 = vector.load %arg2[%187, %c0_46, %c0_47] : memref<4x16x512xbf16, #tpu.memory_space<vmem>>, vector<1x16x512xbf16>
    %189 = vector.shape_cast %188 : vector<1x16x512xbf16> to vector<16x512xbf16>
    %190 = vector.extract_strided_slice %189 {offsets = [0, 0], sizes = [8, 512], strides = [1, 1]} : vector<16x512xbf16> to vector<8x512xbf16>
    %191 = arith.extf %190 : vector<8x512xbf16> to vector<8x512xf32>
    %192 = arith.truncf %157 : vector<8x128xf32> to vector<8x128xbf16>
    %cst_48 = arith.constant dense<0.000000e+00> : vector<8x512xf32>
    %193 = tpu.matmul %192, %3, %cst_48 {dimension_numbers = #tpu.dot_dimension_numbers<[1], [0], [0], [1], [0, 0, 1, 1], [], []>} : vector<8x128xbf16>, vector<128x512xbf16>, vector<8x512xf32> -> vector<8x512xf32>
    %194 = arith.addf %191, %193 : vector<8x512xf32>
    %195 = vector.extract_strided_slice %194 {offsets = [0, 0], sizes = [8, 128], strides = [1, 1]} : vector<8x512xf32> to vector<8x128xf32>
    %196 = math.tanh %195 : vector<8x128xf32>
    %197 = vector.extract_strided_slice %194 {offsets = [0, 128], sizes = [8, 384], strides = [1, 1]} : vector<8x512xf32> to vector<8x384xf32>
    %cst_49 = arith.constant 5.000000e-01 : f32
    %198 = vector.broadcast %cst_49 : f32 to vector<8x384xf32>
    %199 = arith.mulf %198, %197 : vector<8x384xf32>
    %200 = math.tanh %199 : vector<8x384xf32>
    %cst_50 = arith.constant 1.000000e+00 : f32
    %201 = vector.broadcast %cst_50 : f32 to vector<8x384xf32>
    %202 = arith.addf %200, %201 : vector<8x384xf32>
    %cst_51 = arith.constant 5.000000e-01 : f32
    %203 = vector.broadcast %cst_51 : f32 to vector<8x384xf32>
    %204 = arith.mulf %203, %202 : vector<8x384xf32>
    %205 = vector.extract_strided_slice %204 {offsets = [0, 0], sizes = [8, 128], strides = [1, 1]} : vector<8x384xf32> to vector<8x128xf32>
    %206 = vector.extract_strided_slice %204 {offsets = [0, 128], sizes = [8, 128], strides = [1, 1]} : vector<8x384xf32> to vector<8x128xf32>
    %207 = vector.extract_strided_slice %204 {offsets = [0, 256], sizes = [8, 128], strides = [1, 1]} : vector<8x384xf32> to vector<8x128xf32>
    %208 = arith.mulf %196, %205 : vector<8x128xf32>
    %209 = arith.mulf %158, %206 : vector<8x128xf32>
    %210 = arith.addf %208, %209 : vector<8x128xf32>
    %211 = math.tanh %210 : vector<8x128xf32>
    %212 = arith.mulf %211, %207 : vector<8x128xf32>
    %c4_i32_52 = arith.constant 4 : i32
    %213 = arith.muli %arg1, %c4_i32_52 : i32
    %214 = arith.addi %213, %c3_i32 : i32
    %c10_i32_53 = arith.constant 10 : i32
    %215 = arith.cmpi slt, %214, %c10_i32_53 : i32
    %216 = arith.select %215, %212, %157 : vector<8x128xf32>
    %217 = arith.select %215, %210, %158 : vector<8x128xf32>
    %218 = vector.extract_strided_slice %189 {offsets = [8, 0], sizes = [8, 512], strides = [1, 1]} : vector<16x512xbf16> to vector<8x512xbf16>
    %219 = arith.extf %218 : vector<8x512xbf16> to vector<8x512xf32>
    %220 = arith.truncf %185 : vector<8x128xf32> to vector<8x128xbf16>
    %cst_54 = arith.constant dense<0.000000e+00> : vector<8x512xf32>
    %221 = tpu.matmul %220, %3, %cst_54 {dimension_numbers = #tpu.dot_dimension_numbers<[1], [0], [0], [1], [0, 0, 1, 1], [], []>} : vector<8x128xbf16>, vector<128x512xbf16>, vector<8x512xf32> -> vector<8x512xf32>
    %222 = arith.addf %219, %221 : vector<8x512xf32>
    %223 = vector.extract_strided_slice %222 {offsets = [0, 0], sizes = [8, 128], strides = [1, 1]} : vector<8x512xf32> to vector<8x128xf32>
    %224 = math.tanh %223 : vector<8x128xf32>
    %225 = vector.extract_strided_slice %222 {offsets = [0, 128], sizes = [8, 384], strides = [1, 1]} : vector<8x512xf32> to vector<8x384xf32>
    %cst_55 = arith.constant 5.000000e-01 : f32
    %226 = vector.broadcast %cst_55 : f32 to vector<8x384xf32>
    %227 = arith.mulf %226, %225 : vector<8x384xf32>
    %228 = math.tanh %227 : vector<8x384xf32>
    %cst_56 = arith.constant 1.000000e+00 : f32
    %229 = vector.broadcast %cst_56 : f32 to vector<8x384xf32>
    %230 = arith.addf %228, %229 : vector<8x384xf32>
    %cst_57 = arith.constant 5.000000e-01 : f32
    %231 = vector.broadcast %cst_57 : f32 to vector<8x384xf32>
    %232 = arith.mulf %231, %230 : vector<8x384xf32>
    %233 = vector.extract_strided_slice %232 {offsets = [0, 0], sizes = [8, 128], strides = [1, 1]} : vector<8x384xf32> to vector<8x128xf32>
    %234 = vector.extract_strided_slice %232 {offsets = [0, 128], sizes = [8, 128], strides = [1, 1]} : vector<8x384xf32> to vector<8x128xf32>
    %235 = vector.extract_strided_slice %232 {offsets = [0, 256], sizes = [8, 128], strides = [1, 1]} : vector<8x384xf32> to vector<8x128xf32>
    %236 = arith.mulf %224, %233 : vector<8x128xf32>
    %237 = arith.mulf %186, %234 : vector<8x128xf32>
    %238 = arith.addf %236, %237 : vector<8x128xf32>
    %239 = math.tanh %238 : vector<8x128xf32>
    %240 = arith.mulf %239, %235 : vector<8x128xf32>
    %c4_i32_58 = arith.constant 4 : i32
    %241 = arith.muli %arg1, %c4_i32_58 : i32
    %242 = arith.addi %241, %c3_i32 : i32
    %c10_i32_59 = arith.constant 10 : i32
    %243 = arith.cmpi slt, %242, %c10_i32_59 : i32
    %244 = arith.select %243, %240, %185 : vector<8x128xf32>
    %245 = arith.select %243, %238, %186 : vector<8x128xf32>
    %c4_i32_60 = arith.constant 4 : i32
    %246 = tpu.concatenate %216, %244 in 0 : vector<8x128xf32>, vector<8x128xf32> -> vector<16x128xf32>
    %247 = tpu.concatenate %217, %245 in 0 : vector<8x128xf32>, vector<8x128xf32> -> vector<16x128xf32>
    %c0_61 = arith.constant 0 : index
    %c0_62 = arith.constant 0 : index
    %248 = vector.load %arg7[%c0_61, %c0_62] : memref<16x128xf32, #tpu.memory_space<vmem>>, vector<16x128xf32>
    tpu.vector_store %arg7[%c0_61, %c0_62], %246 {strides = array<i32>} : memref<16x128xf32, #tpu.memory_space<vmem>>, vector<16x128xf32>,
    %c0_63 = arith.constant 0 : index
    %c0_64 = arith.constant 0 : index
    %249 = vector.load %arg8[%c0_63, %c0_64] : memref<16x128xf32, #tpu.memory_space<vmem>>, vector<16x128xf32>
    tpu.vector_store %arg8[%c0_63, %c0_64], %247 {strides = array<i32>} : memref<16x128xf32, #tpu.memory_space<vmem>>, vector<16x128xf32>,
    %c2_i32_65 = arith.constant 2 : i32
    %250 = arith.cmpi eq, %arg1, %c2_i32_65 : i32
    %251 = arith.extui %250 : i1 to i32
    %c0_i32_66 = arith.constant 0 : i32
    %252 = arith.cmpi ne, %251, %c0_i32_66 : i32
    scf.if %252 {
      %c0_67 = arith.constant 0 : index
      %c0_68 = arith.constant 0 : index
      %253 = vector.load %arg4[%c0_67, %c0_68] : memref<128x128xf32, #tpu.memory_space<vmem>>, vector<128x128xf32>
      %cst_69 = arith.constant dense<0.000000e+00> : vector<16x128xf32>
      %254 = tpu.matmul %246, %253, %cst_69 {dimension_numbers = #tpu.dot_dimension_numbers<[1], [0], [0], [1], [0, 0, 1, 1], [], []>} : vector<16x128xf32>, vector<128x128xf32>, vector<16x128xf32> -> vector<16x128xf32>
      %c0_70 = arith.constant 0 : index
      %c0_71 = arith.constant 0 : index
      %255 = vector.load %arg5[%c0_70, %c0_71] : memref<1x128xf32, #tpu.memory_space<vmem>>, vector<1x128xf32>
      %256 = vector.broadcast %255 : vector<1x128xf32> to vector<16x128xf32>
      %257 = arith.addf %254, %256 : vector<16x128xf32>
      %c0_72 = arith.constant 0 : index
      %c0_73 = arith.constant 0 : index
      %258 = vector.load %arg6[%c0_72, %c0_73] : memref<16x128xf32, #tpu.memory_space<vmem>>, vector<16x128xf32>
      tpu.vector_store %arg6[%c0_72, %c0_73], %257 {strides = array<i32>} : memref<16x128xf32, #tpu.memory_space<vmem>>, vector<16x128xf32>,
    } else {
    }
    return
  }
  func.func @transform_0(%arg0: i32, %arg1: i32) -> (i32, i32, i32) {
    %c0_i32 = arith.constant 0 : i32
    %c0_i32_0 = arith.constant 0 : i32
    return %arg1, %arg0, %c0_i32 : i32, i32, i32
  }
  func.func @transform_1(%arg0: i32, %arg1: i32) -> (i32, i32) {
    %c0_i32 = arith.constant 0 : i32
    %c0_i32_0 = arith.constant 0 : i32
    %c0_i32_1 = arith.constant 0 : i32
    return %c0_i32, %c0_i32_0 : i32, i32
  }
  func.func @transform_2(%arg0: i32, %arg1: i32) -> (i32, i32) {
    %c0_i32 = arith.constant 0 : i32
    %c0_i32_0 = arith.constant 0 : i32
    %c0_i32_1 = arith.constant 0 : i32
    return %c0_i32, %c0_i32_0 : i32, i32
  }
  func.func @transform_3(%arg0: i32, %arg1: i32) -> (i32, i32) {
    %c0_i32 = arith.constant 0 : i32
    %c0_i32_0 = arith.constant 0 : i32
    %c0_i32_1 = arith.constant 0 : i32
    return %c0_i32, %c0_i32_0 : i32, i32
  }
  func.func @transform_4(%arg0: i32, %arg1: i32) -> (i32, i32) {
    %c0_i32 = arith.constant 0 : i32
    %c0_i32_0 = arith.constant 0 : i32
    return %arg0, %c0_i32 : i32, i32
  }
}

</mosaic_0001>

<bundles_post_ra>
// kernel: tpu_custom_call.1
= control target key start
LH: loop header
LB: loop body
LE: loop exit
PB: predicated region body
PF: predicated region fallthrough
CT: control target
= control target key end

     0   :  { %9 = vsyncpa [#allocation5], 0  ;;  %s2866_s0 = inlined_call_operand.hbm [shape: bf16[12,16,512], index: 0, kind: input, shape index: {}]   ;;  %s2867_s1 = inlined_call_operand.hbm [shape: bf16[128,512], index: 1, kind: input, shape index: {}]   ;;  %s2868_s2 = inlined_call_operand.hbm [shape: f32[128,128], index: 2, kind: input, shape index: {}]   ;;  %s2869_s3 = inlined_call_operand.vmem [shape: f32[1,128], index: 3, kind: input, shape index: {}]   ;;  %s2870_s4 = inlined_call_operand.hbm [shape: f32[16,128], index: 4, kind: output, shape index: {}]  }
   0x1   :  { %11 = vsyncpa [#allocation5 + $0x1], 0 }
   0x2   :  { %12 = vsyncpa [#allocation8], 0 }
   0x3   :  { %13 = vsyncpa [#allocation6], 0  ;;  %s2204_s15 = smov 0   ;;  %s2206_s16 = smov 0  }
   0x4   :  { %s2208_s17 = smov 0   ;;  %s2210_s18 = smov 0  }
   0x5   :  { %s2212_s19 = smov 0   ;;  %s2214_s20 = smov 0  }
   0x6 LB: > { %s1594_s21 = sadd.s32 4294967295, %s2165_s20   ;;  %p53_p0 = scmp.ne.s32.totalorder %s2149_s16, %s2145_s15  ;;  %s2165_s20 = sphi %s2214_s20, %s19_s20   ;;  %s2161_s19 = sphi %s2212_s19, %s2891_s19   ;;  %s2157_s18 = sphi %s2210_s18, %s2890_s18   ;;  %s2153_s17 = sphi %s2208_s17, %s2889_s17   ;;  %s2149_s16 = sphi %s2206_s16, %s2888_s16   ;;  %s2145_s15 = sphi %s2204_s15, %s2887_s15  }
   0x7   : > { %p2236_p1 = scmp.eq.s32.totalorder %s1594_s21, 0  ;;  %p1595_p2 = scmp.ge.s32.totalorder %s2165_s20, 1 }
   0x8   : > { %p153_p3 = scmp.lt.s32.totalorder %s2165_s20, 4  ;;  %s2167_s25 = smov [#allocation7]  }
   0x9   : > { %s2875_s22 = scalar_select %p2236_p1, 1, 0 }
   0xa   : > { %p2244_p4 = por %p2236_p1, %p53_p0  ;;  %p2248_p5 = pnand %p1595_p2, %p153_p3 }
   0xb   : > { %s165_s26 = sshll.u32 %s2167_s25, 4  ;;  %s2168_s28 = smov [#allocation9]   ;;  %s166_s26 = int_to_ptr.vmem [resolvable:$true] %s165_s26 }
   0xc   : > { %s2876_s23 = scalar_select %p2244_p4, 1, 0 }
   0xd   : > { %s2877_s24 = scalar_select %p2248_p5, 1, 0 }
   0xe   : > { %p1760_p6 = pneg %p2248_p5  ;;  %s178_s29 = sshll.u32 %s2168_s28, 4  ;;  %s2260_s29 = int_to_ptr.vmem [resolvable:$true] %s178_s29 }
   0xf   : > { %s1995_s6 = scalar_lea.hbm %s2867_s1, 4096 }
  0x10   : > { %p2256_p7 = pnand %p1760_p6, %p2236_p1  ;;  %p1996_p8 = scmp.ne.s32.totalorder %s2867_s1, %s1995_s6 }
  0x11   : > { %p2002_p12 = scmp.lt.u32.totalorder %s1995_s6, %s2867_s1 }
  0x12   : > { %p1997_p9 = pneg %p2256_p7 }
  0x14   : > { %p1998_p10 = pnand %p1997_p9, %p1996_p8 }
  0x16   : > { %p1999_p11 = pneg %p1998_p10 }
  0x18   : > { %p2004_p13 = pnand %p2002_p12, %p1999_p11 }
  0x1a   : > { %2007 = shalt.err (!%p2004_p13)
}
  0x1b   : > { %s2008_s11 = scalar_lea.vmem %s166_s26, 4096  ;;  %p2016_p6 = scmp.lt.s32.totalorder %s166_s26, %s166_s26 }
  0x1c   : > { %p2009_p0 = scmp.ne.s32.totalorder %s166_s26, %s2008_s11  ;;  %p2017_p1 = scmp.lt.s32.totalorder %s2008_s11, %s2008_s11 }
  0x1e   : > { %p2011_p2 = pnand %p2009_p0, %p1997_p9  ;;  %p2018_p4 = por %p2017_p1, %p2016_p6 }
  0x20   : > { %p2012_p3 = pneg %p2011_p2 }
  0x22   : > { %p2019_p5 = pnand %p2018_p4, %p2012_p3 }
  0x24   : > { %2022 = shalt.err (!%p2019_p5)
}
  0x25   : > { %s2169_s12 = smov 256   ;;  %s2170_s13 = smov 16  }
  0x26   : > { %1763 = dma.hbm_to_vmem [thread:$0]  (!%p2256_p7), %s2867_s1, 4096, %s166_s26, [#allocation8], %s2169_s12, %s2169_s12, %s2170_s13  }
  0x27   : > { %s2023_s30 = scalar_lea.hbm %s2868_s2, 2048 }
  0x28   : > { %p2024_p1 = scmp.ne.s32.totalorder %s2868_s2, %s2023_s30  ;;  %p2030_p8 = scmp.lt.u32.totalorder %s2023_s30, %s2868_s2 }
  0x2a   : > { %p2026_p4 = pnand %p2024_p1, %p1997_p9 }
  0x2c   : > { %p2027_p5 = pneg %p2026_p4 }
  0x2e   : > { %p2032_p10 = pnand %p2030_p8, %p2027_p5 }
  0x30   : > { %2035 = shalt.err (!%p2032_p10)
}
  0x31   : > { %s2036_s26 = scalar_lea.vmem %s2260_s29, 2048  ;;  %p2044_p0 = scmp.lt.s32.totalorder %s2260_s29, %s2260_s29 }
  0x32   : > { %p2037_p11 = scmp.ne.s32.totalorder %s2260_s29, %s2036_s26  ;;  %p2045_p2 = scmp.lt.s32.totalorder %s2036_s26, %s2036_s26 }
  0x34   : > { %p2039_p12 = pnand %p2037_p11, %p1997_p9  ;;  %p2046_p3 = por %p2045_p2, %p2044_p0 }
  0x36   : > { %p2040_p13 = pneg %p2039_p12 }
  0x38   : > { %p2047_p6 = pnand %p2046_p3, %p2040_p13 }
  0x3a   : > { %2050 = shalt.err (!%p2047_p6)
}
  0x3b   : > { %s2171_s9 = smov 128   ;;  %s2172_s10 = smov 8  }
  0x3c   : > { %1766 = dma.hbm_to_vmem [thread:$0]  (!%p2256_p7), %s2868_s2, 2048, %s2260_s29, [#allocation8], %s2171_s9, %s2171_s9, %s2172_s10  }
  0x3d   : > { %s28_s15 = sadd.s32 1, %s2161_s19  ;;  %s40_s25 = sadd.s32 1, %s2153_s17 }
  0x3e   : > { %p29_p9 = scmp.ge.s32.totalorder %s28_s15, 3  ;;  %p47_p1 = scmp.ne.s32.totalorder %s2153_s17, %s2149_s16 }
  0x3f   : > { %p48_p4 = scmp.eq.s32.totalorder %s2165_s20, 0  ;;  %p1773_p5 = scmp.lt.s32.totalorder %s2165_s20, 3 }
  0x40   : > { %s2893_s15 = smov (%p29_p9, %s28_s15), 0  ;;  %s195_s28 = sand.u32 1, %s2153_s17  }
  0x41   : > { %p49_p8 = por %p48_p4, %p47_p1  ;;  %s35_s30 = ssub.s32 %s2161_s19, %s2893_s15 }
  0x42   : > { %p38_p10 = scmp.eq.s32.totalorder %s35_s30, 0  ;;  %s1599_s5 = sshll.u32 %s195_s28, 7 }
  0x43   : > { %s1660_s27 = sshll.u32 %s2161_s19, 11  ;;  %s199_s26 = scalar_lea.vmem [#allocation4], %s1599_s5 }
  0x44   : > { %s2325_s6 = scalar_select %p38_p10, %s2153_s17, %s40_s25  }
  0x45   : > { %s2330_s8 = scalar_lea.hbm %s2866_s0, %s1660_s27  ;;  %s210_s9 = sshll.u32 %s199_s26, 4  ;;  %s2332_s9 = int_to_ptr.vmem [resolvable:$true] %s210_s9 }
  0x46   : > { %p2336_p7 = pnand %p1773_p5, %p49_p8  ;;  %s2340_s11 = scalar_lea.sflag [#allocation5], %s195_s28 }
  0x47   : > { %s2051_s14 = scalar_lea.hbm %s2330_s8, 2048  ;;  %s2056_s5 = scalar_lea.hbm %s2866_s0, 6144 }
  0x48   : > { %p2052_p11 = scmp.ne.s32.totalorder %s2330_s8, %s2051_s14  ;;  %p2053_p12 = pneg %p2336_p7 }
  0x49   : > { %p2057_p2 = scmp.lt.u32.totalorder %s2330_s8, %s2866_s0  ;;  %p2058_p3 = scmp.lt.u32.totalorder %s2056_s5, %s2051_s14 }
  0x4a   : > { %p2054_p13 = pnand %p2053_p12, %p2052_p11  ;;  %p2060_p9 = scmp.lt.u32.totalorder %s2051_s14, %s2330_s8 }
  0x4b   : > { %p2059_p6 = por %p2058_p3, %p2057_p2 }
  0x4c   : > { %p2055_p0 = pneg %p2054_p13 }
  0x4d   : > { %p2061_p1 = por %p2060_p9, %p2059_p6 }
  0x4f   : > { %p2062_p4 = pnand %p2061_p1, %p2055_p0 }
  0x51   : > { %2065 = shalt.err (!%p2062_p4)
}
  0x52   : > { %s2066_s28 = scalar_lea.vmem %s2332_s9, 2048  ;;  %s2173_s29 = smov [#allocation4]  }
  0x53   : > { %p2067_p5 = scmp.ne.s32.totalorder %s2332_s9, %s2066_s28  ;;  %s2071_s26 = sshll.u32 %s2173_s29, 4  ;;  %s2072_s26 = int_to_ptr.vmem [resolvable:$false] %s2071_s26 }
  0x54   : > { %s2073_s25 = scalar_lea.vmem %s2072_s26, 4096  ;;  %p2074_p11 = scmp.lt.s32.totalorder %s2332_s9, %s2072_s26 }
  0x55   : > { %p2069_p8 = pnand %p2067_p5, %p2053_p12  ;;  %p2075_p13 = scmp.lt.s32.totalorder %s2073_s25, %s2066_s28 }
  0x57   : > { %p2070_p10 = pneg %p2069_p8  ;;  %p2076_p2 = por %p2075_p13, %p2074_p11 }
  0x59   : > { %p2077_p3 = pnand %p2076_p2, %p2070_p10 }
  0x5b   : > { %2080 = shalt.err (!%p2077_p3)
}
  0x5c   : > { %1770 = dma.hbm_to_vmem [thread:$0]  (!%p2336_p7), %s2330_s8, 2048, %s2332_s9, %s2340_s11, %s2169_s12, %s2169_s12, %s2170_s13  }
  0x5d   : > { %p2880_p12 = scmp.ne.s32.totalorder %s2877_s24, 0 }
  0x5e   : > { %s224_s14 = sand.u32 (!%p2880_p12), 1, %s2149_s16   ;;  %p2881_p0 = scmp.ne.s32.totalorder (!%p2880_p12), %s2876_s23, 0 }
  0x5f   : > { %222 = sbr.rel (%p2880_p12) target bundleno = 1450 (0x5aa), region = 36  ;;  %s1604_s30 = sshll.u32 (!%p2880_p12), %s224_s14, 7 }
  0x60   : > { %s225_s5 = scalar_lea.sflag (!%p2880_p12), [#allocation5], %s224_s14  ;;  %s2374_s27 = scalar_lea.vmem (!%p2880_p12), [#allocation4], %s1604_s30 }
  0x66   : > { %2132 = dma.done.wait (%p2881_p0), %s225_s5, 2048  }
  0x67   : > { %2134 = vsyncadd (%p2881_p0), %s225_s5, 4294965248  ;;  %p2882_p6 = scmp.ne.s32.totalorder %s2875_s22, 0 }
  0x69   : > { %2136 = dma.done.wait (%p2882_p6), [#allocation8], 6144  }
  0x6a   : > { %2138 = vsyncadd (%p2882_p6), [#allocation8], 4294961152  ;;  %p1607_p7 = scmp.ne.s32.totalorder %s2157_s18, 0 }
  0x6b   : > { %v2174_v0 = vmov (!%p1607_p7), 0.0  }
  0x6c   : > { %263 = sbr.rel (%p1607_p7) target bundleno = 115 (0x73), region = 52  ;;  %264 = vst [vmem:[#allocation2] sm:$0xff] (!%p1607_p7), %v2174_v0  ;;  %265 = vst [vmem:[#allocation2 + $0x8] sm:$0xff] (!%p1607_p7), %v2174_v0 }
  0x6d   : > { %266 = vst [vmem:[#allocation3] sm:$0xff] (!%p1607_p7), %v2174_v0  ;;  %267 = vst [vmem:[#allocation3 + $0x8] sm:$0xff] (!%p1607_p7), %v2174_v0 }
  0x73 PF: > { %v2385_v1 = vld [vmem:[#allocation7 + $0x4] ss:$16 sps:$4 sm:$0xff]   ;;  %v2387_v2 = vld [vmem:[#allocation7 + $0xc] ss:$16 sps:$4 sm:$0xff]   ;;  %v2175_v3 = vmov 0   ;;  %s2564_s22 = sshll.u32 %s2157_s18, 2 }
  0x74   : > { %505 = vmatprep.mubr.bf16.mxu0 %v2175_v3  ;;  %546 = vmatprep.mubr.bf16.mxu1 %v2175_v3  ;;  %v2392_v4 = vld [vmem:[#allocation7] ss:$16 sps:$4 sm:$0xff]   ;;  %v2394_v5 = vld [vmem:[#allocation7 + $0x8] ss:$16 sps:$4 sm:$0xff]   ;;  %v2397_v6 = vld [vmem:[#allocation7 + $0x24] ss:$16 sps:$4 sm:$0xff]  }
  0x75   : > { %473 = vmatprep.subr.bf16.mxu0 %v2385_v1  ;;  %514 = vmatprep.subr.bf16.mxu1 %v2387_v2  ;;  %v2401_v7 = vld [vmem:[#allocation7 + $0x2c] ss:$16 sps:$4 sm:$0xff]   ;;  %v2403_v8 = vld [vmem:[#allocation7 + $0x20] ss:$16 sps:$4 sm:$0xff]   ;;  %v2406_v9 = vld [vmem:[#allocation7 + $0x28] ss:$16 sps:$4 sm:$0xff]  }
  0x76   : > { %474 = vmatpush1.bf16.msra.mxu0 %v2392_v4  ;;  %515 = vmatpush1.bf16.msra.mxu1 %v2394_v5  ;;  %v2409_v10 = vld [vmem:[#allocation7 + $0x44] ss:$16 sps:$4 sm:$0xff]   ;;  %v2411_v11 = vld [vmem:[#allocation7 + $0x4c] ss:$16 sps:$4 sm:$0xff]   ;;  %v2413_v12 = vld [vmem:[#allocation7 + $0x40] ss:$16 sps:$4 sm:$0xff]  }
  0x77   : > { %475 = vmatprep.subr.bf16.mxu0 %v2397_v6  ;;  %516 = vmatprep.subr.bf16.mxu1 %v2401_v7  ;;  %v2415_v13 = vld [vmem:[#allocation7 + $0x48] ss:$16 sps:$4 sm:$0xff]   ;;  %v2419_v14 = vld [vmem:[#allocation7 + $0x64] ss:$16 sps:$4 sm:$0xff]   ;;  %v2423_v15 = vld [vmem:[#allocation7 + $0x6c] ss:$16 sps:$4 sm:$0xff]  }
  0x78   : > { %v2425_v16 = vld [vmem:[#allocation7 + $0x60] ss:$16 sps:$4 sm:$0xff]   ;;  %v2429_v17 = vld [vmem:[#allocation7 + $0x68] ss:$16 sps:$4 sm:$0xff]   ;;  %v2431_v18 = vld [vmem:[#allocation7 + $0x84] ss:$16 sps:$4 sm:$0xff]  }
  0x79   : > { %v2435_v19 = vld [vmem:[#allocation7 + $0x8c] ss:$16 sps:$4 sm:$0xff]   ;;  %v2437_v20 = vld [vmem:[#allocation7 + $0x80] ss:$16 sps:$4 sm:$0xff]   ;;  %v2439_v21 = vld [vmem:[#allocation7 + $0x88] ss:$16 sps:$4 sm:$0xff]  }
  0x7a   : > { %476 = vmatpush1.bf16.msra.mxu0 %v2403_v8  ;;  %517 = vmatpush1.bf16.msra.mxu1 %v2406_v9  ;;  %v2443_v22 = vld [vmem:[#allocation7 + $0xa4] ss:$16 sps:$4 sm:$0xff]   ;;  %v2447_v23 = vld [vmem:[#allocation7 + $0xac] ss:$16 sps:$4 sm:$0xff]   ;;  %v2451_v24 = vld [vmem:[#allocation7 + $0xa0] ss:$16 sps:$4 sm:$0xff]  }
  0x7b   : > { %477 = vmatprep.subr.bf16.mxu0 %v2409_v10  ;;  %518 = vmatprep.subr.bf16.mxu1 %v2411_v11  ;;  %v2453_v25 = vld [vmem:[#allocation7 + $0xa8] ss:$16 sps:$4 sm:$0xff]   ;;  %v2457_v26 = vld [vmem:[#allocation7 + $0xc4] ss:$16 sps:$4 sm:$0xff]   ;;  %v2459_v27 = vld [vmem:[#allocation7 + $0xcc] ss:$16 sps:$4 sm:$0xff]  }
  0x7c   : > { %v2463_v28 = vld [vmem:[#allocation7 + $0xc0] ss:$16 sps:$4 sm:$0xff]   ;;  %v2465_v29 = vld [vmem:[#allocation7 + $0xc8] ss:$16 sps:$4 sm:$0xff]   ;;  %v2469_v30 = vld [vmem:[#allocation7 + $0xe4] ss:$16 sps:$4 sm:$0xff]  }
  0x7d   : > { %v2471_v31 = vld [vmem:[#allocation7 + $0xec] ss:$16 sps:$4 sm:$0xff]   ;;  %v2475_v32 = vld [vmem:[#allocation7 + $0xe0] ss:$16 sps:$4 sm:$0xff]   ;;  %v2477_v33 = vld [vmem:[#allocation7 + $0xe8] ss:$16 sps:$4 sm:$0xff]  }
  0x7e   : > { %478 = vmatpush1.bf16.msra.mxu0 %v2413_v12  ;;  %519 = vmatpush1.bf16.msra.mxu1 %v2415_v13  ;;  %v2479_v34 = vld [vmem:[#allocation2] sm:$0xff]  ;;  %v2517_v36 = vld [vmem:[#allocation2 + $0x8] sm:$0xff]  ;;  %p578_p9 = scmp.lt.s32.totalorder %s2564_s22, 10  ;;  %v302_v62 = vld [vmem:[#allocation3] sm:$0xff]  ;;  %s809_s24 = sadd.s32 1, %s2564_s22 }
  0x7f   : > { %479 = vmatprep.subr.bf16.mxu0 %v2419_v14  ;;  %520 = vmatprep.subr.bf16.mxu1 %v2423_v15  ;;  %v312_v35 = vpack.c.bf16 %v2479_v34, %v2479_v34  ;;  %v588_v37 = vpack.c.bf16 %v2517_v36, %v2517_v36  ;;  %v305_v38 = vld [vmem:[%s2374_s27 + $0x8] sm:$0xff]  ;;  %v304_v39 = vld [vmem:[%s2374_s27] sm:$0xff]  ;;  %p810_p1 = scmp.lt.s32.totalorder %s809_s24, 10  ;;  %s1041_s13 = sadd.s32 2, %s2564_s22 }
  0x80   : > { %v310_v40 = vunpack.c.l.bf16 %v305_v38  ;;  %v309_v41 = vunpack.c.h.bf16 %v304_v39  ;;  %v308_v47 = vunpack.c.l.bf16 %v304_v39  ;;  %v311_v55 = vunpack.c.h.bf16 %v305_v38  ;;  %s579_s23 = scalar_select %p578_p9, 1, 0 }
  0x81   : > { %s811_s12 = scalar_select %p810_p1, 1, 0 }
  0x82   : > { %480 = vmatpush1.bf16.msra.mxu0 %v2425_v16  ;;  %521 = vmatpush1.bf16.msra.mxu1 %v2429_v17  ;;  %p1042_p4 = scmp.lt.s32.totalorder %s1041_s13, 10  ;;  %s1273_s9 = sadd.s32 3, %s2564_s22 }
  0x83   : > { %481 = vmatprep.subr.bf16.mxu0 %v2431_v18  ;;  %522 = vmatprep.subr.bf16.mxu1 %v2435_v19  ;;  %p1274_p5 = scmp.lt.s32.totalorder %s1273_s9, 10  ;;  %p1653_p8 = scmp.ne.s32.totalorder %s2157_s18, 2 }
  0x84   : > { %s1043_s8 = scalar_select %p1042_p4, 1, 0 }
  0x85   : > { %s1275_s10 = scalar_select %p1274_p5, 1, 0 }
  0x86   : > { %482 = vmatpush1.bf16.msra.mxu0 %v2437_v20  ;;  %523 = vmatpush1.bf16.msra.mxu1 %v2439_v21 }
  0x87   : > { %483 = vmatprep.subr.bf16.mxu0 %v2443_v22  ;;  %524 = vmatprep.subr.bf16.mxu1 %v2447_v23 }
  0x8a   : > { %484 = vmatpush1.bf16.msra.mxu0 %v2451_v24  ;;  %525 = vmatpush1.bf16.msra.mxu1 %v2453_v25 }
  0x8b   : > { %485 = vmatprep.subr.bf16.mxu0 %v2457_v26  ;;  %526 = vmatprep.subr.bf16.mxu1 %v2459_v27 }
  0x8e   : > { %486 = vmatpush1.bf16.msra.mxu0 %v2463_v28  ;;  %527 = vmatpush1.bf16.msra.mxu1 %v2465_v29 }
  0x8f   : > { %487 = vmatprep.subr.bf16.mxu0 %v2469_v30  ;;  %528 = vmatprep.subr.bf16.mxu1 %v2471_v31 }
  0x92   : > { %488 = vmatpush1.bf16.msra.mxu0 %v2475_v32  ;;  %529 = vmatpush1.bf16.msra.mxu1 %v2477_v33 }
  0x93   : > { %589 = vmatprep.subr.bf16.mxu0 %v2385_v1  ;;  %630 = vmatprep.subr.bf16.mxu1 %v2387_v2 }
  0x95   : > { %506 = vmatmul.mubr.bf16.vlgmr.msra.gmra.mrb[0].mxu0 %v312_v35  ;;  %547 = vmatmul.mubr.bf16.vlgmr.msra.gmra.mrb[0].mxu1 %v312_v35 }
  0x96   : > { %590 = vmatpush1.bf16.msra.mxu0 %v2392_v4  ;;  %631 = vmatpush1.bf16.msra.mxu1 %v2394_v5 }
  0x97   : > { %591 = vmatprep.subr.bf16.mxu0 %v2397_v6  ;;  %632 = vmatprep.subr.bf16.mxu1 %v2401_v7 }
  0x98   : > { %621 = vmatprep.mubr.bf16.mxu0 %v2175_v3  ;;  %662 = vmatprep.mubr.bf16.mxu1 %v2175_v3 }
  0x9a   : > { %592 = vmatpush1.bf16.msra.mxu0 %v2403_v8  ;;  %633 = vmatpush1.bf16.msra.mxu1 %v2406_v9 }
  0x9b   : > { %593 = vmatprep.subr.bf16.mxu0 %v2409_v10  ;;  %634 = vmatprep.subr.bf16.mxu1 %v2411_v11 }
  0x9e   : > { %594 = vmatpush1.bf16.msra.mxu0 %v2413_v12  ;;  %635 = vmatpush1.bf16.msra.mxu1 %v2415_v13 }
  0x9f   : > { %595 = vmatprep.subr.bf16.mxu0 %v2419_v14  ;;  %636 = vmatprep.subr.bf16.mxu1 %v2423_v15 }
  0xa2   : > { %596 = vmatpush1.bf16.msra.mxu0 %v2425_v16  ;;  %637 = vmatpush1.bf16.msra.mxu1 %v2429_v17 }
  0xa3   : > { %597 = vmatprep.subr.bf16.mxu0 %v2431_v18  ;;  %638 = vmatprep.subr.bf16.mxu1 %v2435_v19 }
  0xa6   : > { %598 = vmatpush1.bf16.msra.mxu0 %v2437_v20  ;;  %639 = vmatpush1.bf16.msra.mxu1 %v2439_v21 }
  0xa7   : > { %599 = vmatprep.subr.bf16.mxu0 %v2443_v22  ;;  %640 = vmatprep.subr.bf16.mxu1 %v2447_v23 }
  0xaa   : > { %600 = vmatpush1.bf16.msra.mxu0 %v2451_v24  ;;  %641 = vmatpush1.bf16.msra.mxu1 %v2453_v25 }
  0xab   : > { %601 = vmatprep.subr.bf16.mxu0 %v2457_v26  ;;  %642 = vmatprep.subr.bf16.mxu1 %v2459_v27 }
  0xae   : > { %602 = vmatpush1.bf16.msra.mxu0 %v2463_v28  ;;  %643 = vmatpush1.bf16.msra.mxu1 %v2465_v29 }
  0xaf   : > { %603 = vmatprep.subr.bf16.mxu0 %v2469_v30  ;;  %644 = vmatprep.subr.bf16.mxu1 %v2471_v31 }
  0xb2   : > { %604 = vmatpush1.bf16.msra.mxu0 %v2475_v32  ;;  %645 = vmatpush1.bf16.msra.mxu1 %v2477_v33 }
  0xb3   : > { %705 = vmatprep.subr.bf16.mxu0 %v2385_v1  ;;  %746 = vmatprep.subr.bf16.mxu1 %v2387_v2 }
  0xb5   : > { %622 = vmatmul.mubr.bf16.vlgmr.msra.gmra.mrb[4].mxu0 %v588_v37  ;;  %663 = vmatmul.mubr.bf16.vlgmr.msra.gmra.mrb[4].mxu1 %v588_v37  ;;  %v580_v37 = vstv %s579_s23 }
  0xb6   : > { %706 = vmatpush1.bf16.msra.mxu0 %v2392_v4  ;;  %747 = vmatpush1.bf16.msra.mxu1 %v2394_v5  ;;  %vm2567_vm0 = vcmp.eq.s32.totalorder %v580_v37, 1 }
  0xb7   : > { %707 = vmatprep.subr.bf16.mxu0 %v2397_v6  ;;  %748 = vmatprep.subr.bf16.mxu1 %v2401_v7 }
  0xb8   : > { %737 = vmatprep.mubr.bf16.mxu0 %v2175_v3  ;;  %778 = vmatprep.mubr.bf16.mxu1 %v2175_v3 }
  0xba   : > { %708 = vmatpush1.bf16.msra.mxu0 %v2403_v8  ;;  %749 = vmatpush1.bf16.msra.mxu1 %v2406_v9 }
  0xbb   : > { %709 = vmatprep.subr.bf16.mxu0 %v2409_v10  ;;  %750 = vmatprep.subr.bf16.mxu1 %v2411_v11 }
  0xbe   : > { %710 = vmatpush1.bf16.msra.mxu0 %v2413_v12  ;;  %751 = vmatpush1.bf16.msra.mxu1 %v2415_v13 }
  0xbf   : > { %711 = vmatprep.subr.bf16.mxu0 %v2419_v14  ;;  %752 = vmatprep.subr.bf16.mxu1 %v2423_v15 }
  0xc2   : > { %712 = vmatpush1.bf16.msra.mxu0 %v2425_v16  ;;  %753 = vmatpush1.bf16.msra.mxu1 %v2429_v17 }
  0xc3   : > { %713 = vmatprep.subr.bf16.mxu0 %v2431_v18  ;;  %754 = vmatprep.subr.bf16.mxu1 %v2435_v19 }
  0xc6   : > { %714 = vmatpush1.bf16.msra.mxu0 %v2437_v20  ;;  %755 = vmatpush1.bf16.msra.mxu1 %v2439_v21 }
  0xc7   : > { %715 = vmatprep.subr.bf16.mxu0 %v2443_v22  ;;  %756 = vmatprep.subr.bf16.mxu1 %v2447_v23 }
  0xca   : > { %716 = vmatpush1.bf16.msra.mxu0 %v2451_v24  ;;  %757 = vmatpush1.bf16.msra.mxu1 %v2453_v25 }
  0xcb   : > { %717 = vmatprep.subr.bf16.mxu0 %v2457_v26  ;;  %758 = vmatprep.subr.bf16.mxu1 %v2459_v27 }
  0xce   : > { %718 = vmatpush1.bf16.msra.mxu0 %v2463_v28  ;;  %759 = vmatpush1.bf16.msra.mxu1 %v2465_v29 }
  0xcf   : > { %719 = vmatprep.subr.bf16.mxu0 %v2469_v30  ;;  %760 = vmatprep.subr.bf16.mxu1 %v2471_v31 }
  0xd2   : > { %720 = vmatpush1.bf16.msra.mxu0 %v2475_v32  ;;  %761 = vmatpush1.bf16.msra.mxu1 %v2477_v33 }
  0xd3   : > { %821 = vmatprep.subr.bf16.mxu0 %v2385_v1  ;;  %862 = vmatprep.subr.bf16.mxu1 %v2387_v2 }
 0x168   : > { %v507_v42 = vpop.f32.mrb[0].mxu0  ;;  %v548_v43 = vpop.f32.mrb[0].mxu1 }
 0x169   : > { %v557_v44 = vadd.f32 %v548_v43, %v310_v40  ;;  %v509_v45 = vpop.f32.mrb[1].mxu0  ;;  %v550_v46 = vpop.f32.mrb[1].mxu1  ;;  %v555_v56 = vadd.f32 %v507_v42, %v308_v47 }
 0x16a   : > { %v556_v48 = vadd.f32 %v509_v45, %v309_v41  ;;  %v511_v49 = vpop.f32.mrb[2].mxu0  ;;  %v552_v50 = vpop.f32.mrb[2].mxu1  ;;  %v558_v57 = vadd.f32 %v550_v46, %v311_v55  ;;  %v306_v46 = vld [vmem:[%s2374_s27 + $0x10] sm:$0xff]  ;;  %v1641_v41 = vld [vmem:[%s2374_s27 + $0x20] sm:$0xff] }
 0x16b   : > { %v561_v51 = vmul.f32 0.5, %v557_v44  ;;  %v512_v52 = vpop.f32.mrb[3].mxu0  ;;  %v553_v53 = vpop.f32.mrb[3].mxu1  ;;  %v307_v44 = vld [vmem:[%s2374_s27 + $0x18] sm:$0xff]  ;;  %v585_v49 = vunpack.c.h.bf16 %v306_v46 }
 0x16c   : > { %v560_v54 = vmul.f32 0.5, %v556_v48  ;;  %v562_v58 = vmul.f32 0.5, %v558_v57  ;;  %v586_v47 = vunpack.c.l.bf16 %v307_v44  ;;  %v587_v37 = vunpack.c.h.bf16 %v307_v44 }
 0x16d   : > { %1885 = vtanh.f32 %v561_v51 }
 0x16e   : > { %1887 = vtanh.f32 %v560_v54 }
 0x16f   : > { %1889 = vtanh.f32 %v555_v56  ;;  %v584_v56 = vunpack.c.l.bf16 %v306_v46 }
 0x170   : > { %1891 = vtanh.f32 %v562_v58 }
 0x177   : > { %v1886_v59 = vpop.eup %1885 }
 0x178   : > { %v1888_v60 = vpop.eup %1887  ;;  %v567_v61 = vadd.f32 1.0, %v1886_v59 }
 0x179   : > { %v566_v63 = vadd.f32 1.0, %v1888_v60  ;;  %v1890_v38 = vpop.eup %1889 }
 0x17a   : > { %v570_v0 = vmul.f32 0.5, %v567_v61  ;;  %v1892_v45 = vpop.eup %1891 }
 0x17b   : > { %v569_v35 = vmul.f32 0.5, %v566_v63  ;;  %v568_v48 = vadd.f32 1.0, %v1892_v45 }
 0x17c   : > { %v573_v39 = vmul.f32 %v570_v0, %v302_v62 }
 0x17d   : > { %v572_v40 = vmul.f32 %v1890_v38, %v569_v35  ;;  %v571_v55 = vmul.f32 0.5, %v568_v48 }
 0x17f   : > { %v574_v42 = vadd.f32 %v573_v39, %v572_v40 }
 0x181   : > { %1893 = vtanh.f32 %v574_v42  ;;  %v2573_v43 = vsel %vm2567_vm0, %v574_v42, %v302_v62 }
 0x188   : > { %v623_v50 = vpop.f32.mrb[4].mxu0  ;;  %v664_v51 = vpop.f32.mrb[4].mxu1 }
 0x189   : > { %v673_v52 = vadd.f32 %v664_v51, %v586_v47  ;;  %v625_v53 = vpop.f32.mrb[5].mxu0  ;;  %v666_v54 = vpop.f32.mrb[5].mxu1  ;;  %v671_v38 = vadd.f32 %v623_v50, %v584_v56  ;;  %v303_v47 = vld [vmem:[#allocation3 + $0x8] sm:$0xff] }
 0x18a   : > { %v672_v57 = vadd.f32 %v625_v53, %v585_v49  ;;  %v627_v58 = vpop.f32.mrb[6].mxu0  ;;  %v668_v59 = vpop.f32.mrb[6].mxu1  ;;  %v674_v42 = vadd.f32 %v666_v54, %v587_v37 }
 0x18b   : > { %v1894_v60 = vpop.eup %1893  ;;  %v677_v61 = vmul.f32 0.5, %v673_v52  ;;  %v628_v62 = vpop.f32.mrb[7].mxu0 }
 0x18c   : > { %v669_v63 = vpop.f32.mrb[7].mxu1  ;;  %v576_v0 = vmul.f32 %v1894_v60, %v571_v55  ;;  %v676_v35 = vmul.f32 0.5, %v672_v57 }
 0x18d   : > { %1895 = vtanh.f32 %v677_v61 }
 0x18e   : > { %1897 = vtanh.f32 %v676_v35  ;;  %v2580_v39 = vsel %vm2567_vm0, %v576_v0, %v2479_v34  ;;  %v678_v34 = vmul.f32 0.5, %v674_v42  ;;  %v701_v0 = vunpack.c.h.bf16 %v1641_v41 }
 0x18f   : > { %v704_v40 = vpack.c.bf16 %v2580_v39, %v2580_v39  ;;  %1899 = vtanh.f32 %v671_v38 }
 0x190   : > { %1901 = vtanh.f32 %v678_v34  ;;  %v700_v34 = vunpack.c.l.bf16 %v1641_v41  ;;  %v2666_v41 = vstv %s811_s12 }
 0x191   : > { %738 = vmatmul.mubr.bf16.vlgmr.msra.gmra.mrb[8].mxu0 %v704_v40  ;;  %779 = vmatmul.mubr.bf16.vlgmr.msra.gmra.mrb[8].mxu1 %v704_v40  ;;  %vm813_vm1 = vcmp.eq.s32.totalorder %v2666_v41, 1  ;;  %v1648_v41 = vld [vmem:[%s2374_s27 + $0x58] sm:$0xff] }
 0x192   : > { %822 = vmatpush1.bf16.msra.mxu0 %v2392_v4  ;;  %863 = vmatpush1.bf16.msra.mxu1 %v2394_v5 }
 0x193   : > { %823 = vmatprep.subr.bf16.mxu0 %v2397_v6  ;;  %864 = vmatprep.subr.bf16.mxu1 %v2401_v7 }
 0x194   : > { %853 = vmatprep.mubr.bf16.mxu0 %v2175_v3  ;;  %894 = vmatprep.mubr.bf16.mxu1 %v2175_v3 }
 0x196   : > { %824 = vmatpush1.bf16.msra.mxu0 %v2403_v8  ;;  %865 = vmatpush1.bf16.msra.mxu1 %v2406_v9 }
 0x197   : > { %v1896_v44 = vpop.eup %1895  ;;  %825 = vmatprep.subr.bf16.mxu0 %v2409_v10  ;;  %866 = vmatprep.subr.bf16.mxu1 %v2411_v11 }
 0x198   : > { %v1898_v45 = vpop.eup %1897  ;;  %v683_v46 = vadd.f32 1.0, %v1896_v44 }
 0x199   : > { %v682_v48 = vadd.f32 1.0, %v1898_v45  ;;  %v1900_v51 = vpop.eup %1899 }
 0x19a   : > { %v686_v49 = vmul.f32 0.5, %v683_v46  ;;  %826 = vmatpush1.bf16.msra.mxu0 %v2413_v12  ;;  %867 = vmatpush1.bf16.msra.mxu1 %v2415_v13  ;;  %v1902_v56 = vpop.eup %1901 }
 0x19b   : > { %v685_v50 = vmul.f32 0.5, %v682_v48  ;;  %827 = vmatprep.subr.bf16.mxu0 %v2419_v14  ;;  %868 = vmatprep.subr.bf16.mxu1 %v2423_v15  ;;  %v684_v57 = vadd.f32 1.0, %v1902_v56 }
 0x19c   : > { %v689_v52 = vmul.f32 %v686_v49, %v303_v47 }
 0x19d   : > { %v688_v53 = vmul.f32 %v1900_v51, %v685_v50  ;;  %v687_v58 = vmul.f32 0.5, %v684_v57 }
 0x19e   : > { %828 = vmatpush1.bf16.msra.mxu0 %v2425_v16  ;;  %869 = vmatpush1.bf16.msra.mxu1 %v2429_v17 }
 0x19f   : > { %v690_v54 = vadd.f32 %v689_v52, %v688_v53  ;;  %829 = vmatprep.subr.bf16.mxu0 %v2431_v18  ;;  %870 = vmatprep.subr.bf16.mxu1 %v2435_v19 }
 0x1a1   : > { %1903 = vtanh.f32 %v690_v54  ;;  %v2604_v55 = vsel %vm2567_vm0, %v690_v54, %v303_v47 }
 0x1a2   : > { %830 = vmatpush1.bf16.msra.mxu0 %v2437_v20  ;;  %871 = vmatpush1.bf16.msra.mxu1 %v2439_v21 }
 0x1a3   : > { %831 = vmatprep.subr.bf16.mxu0 %v2443_v22  ;;  %872 = vmatprep.subr.bf16.mxu1 %v2447_v23 }
 0x1a6   : > { %832 = vmatpush1.bf16.msra.mxu0 %v2451_v24  ;;  %873 = vmatpush1.bf16.msra.mxu1 %v2453_v25 }
 0x1a7   : > { %833 = vmatprep.subr.bf16.mxu0 %v2457_v26  ;;  %874 = vmatprep.subr.bf16.mxu1 %v2459_v27 }
 0x1aa   : > { %834 = vmatpush1.bf16.msra.mxu0 %v2463_v28  ;;  %875 = vmatpush1.bf16.msra.mxu1 %v2465_v29 }
 0x1ab   : > { %v1904_v59 = vpop.eup %1903  ;;  %835 = vmatprep.subr.bf16.mxu0 %v2469_v30  ;;  %876 = vmatprep.subr.bf16.mxu1 %v2471_v31 }
 0x1ac   : > { %v692_v60 = vmul.f32 %v1904_v59, %v687_v58 }
 0x1ae   : > { %836 = vmatpush1.bf16.msra.mxu0 %v2475_v32  ;;  %877 = vmatpush1.bf16.msra.mxu1 %v2477_v33  ;;  %v2623_v61 = vsel %vm2567_vm0, %v692_v60, %v2517_v36  ;;  %v1642_v36 = vld [vmem:[%s2374_s27 + $0x28] sm:$0xff] }
 0x1af   : > { %v820_v62 = vpack.c.bf16 %v2623_v61, %v2623_v61  ;;  %937 = vmatprep.subr.bf16.mxu0 %v2385_v1  ;;  %978 = vmatprep.subr.bf16.mxu1 %v2387_v2  ;;  %v702_v63 = vunpack.c.l.bf16 %v1642_v36  ;;  %v703_v51 = vunpack.c.h.bf16 %v1642_v36 }
 0x1b1   : > { %854 = vmatmul.mubr.bf16.vlgmr.msra.gmra.mrb[12].mxu0 %v820_v62  ;;  %895 = vmatmul.mubr.bf16.vlgmr.msra.gmra.mrb[12].mxu1 %v820_v62 }
 0x1b2   : > { %938 = vmatpush1.bf16.msra.mxu0 %v2392_v4  ;;  %979 = vmatpush1.bf16.msra.mxu1 %v2394_v5 }
 0x1b3   : > { %939 = vmatprep.subr.bf16.mxu0 %v2397_v6  ;;  %980 = vmatprep.subr.bf16.mxu1 %v2401_v7 }
 0x1b4   : > { %969 = vmatprep.mubr.bf16.mxu0 %v2175_v3  ;;  %1010 = vmatprep.mubr.bf16.mxu1 %v2175_v3 }
 0x1b6   : > { %940 = vmatpush1.bf16.msra.mxu0 %v2403_v8  ;;  %981 = vmatpush1.bf16.msra.mxu1 %v2406_v9 }
 0x1b7   : > { %941 = vmatprep.subr.bf16.mxu0 %v2409_v10  ;;  %982 = vmatprep.subr.bf16.mxu1 %v2411_v11 }
 0x1ba   : > { %942 = vmatpush1.bf16.msra.mxu0 %v2413_v12  ;;  %983 = vmatpush1.bf16.msra.mxu1 %v2415_v13 }
 0x1bb   : > { %943 = vmatprep.subr.bf16.mxu0 %v2419_v14  ;;  %984 = vmatprep.subr.bf16.mxu1 %v2423_v15 }
 0x1be   : > { %944 = vmatpush1.bf16.msra.mxu0 %v2425_v16  ;;  %985 = vmatpush1.bf16.msra.mxu1 %v2429_v17 }
 0x1bf   : > { %945 = vmatprep.subr.bf16.mxu0 %v2431_v18  ;;  %986 = vmatprep.subr.bf16.mxu1 %v2435_v19 }
 0x1c2   : > { %946 = vmatpush1.bf16.msra.mxu0 %v2437_v20  ;;  %987 = vmatpush1.bf16.msra.mxu1 %v2439_v21 }
 0x1c3   : > { %947 = vmatprep.subr.bf16.mxu0 %v2443_v22  ;;  %988 = vmatprep.subr.bf16.mxu1 %v2447_v23 }
 0x1c6   : > { %948 = vmatpush1.bf16.msra.mxu0 %v2451_v24  ;;  %989 = vmatpush1.bf16.msra.mxu1 %v2453_v25 }
 0x1c7   : > { %949 = vmatprep.subr.bf16.mxu0 %v2457_v26  ;;  %990 = vmatprep.subr.bf16.mxu1 %v2459_v27 }
 0x1ca   : > { %950 = vmatpush1.bf16.msra.mxu0 %v2463_v28  ;;  %991 = vmatpush1.bf16.msra.mxu1 %v2465_v29 }
 0x1cb   : > { %951 = vmatprep.subr.bf16.mxu0 %v2469_v30  ;;  %992 = vmatprep.subr.bf16.mxu1 %v2471_v31 }
 0x1ce   : > { %952 = vmatpush1.bf16.msra.mxu0 %v2475_v32  ;;  %993 = vmatpush1.bf16.msra.mxu1 %v2477_v33 }
 0x1cf   : > { %1053 = vmatprep.subr.bf16.mxu0 %v2385_v1  ;;  %1094 = vmatprep.subr.bf16.mxu1 %v2387_v2 }
 0x264   : > { %v739_v35 = vpop.f32.mrb[8].mxu0  ;;  %v780_v37 = vpop.f32.mrb[8].mxu1 }
 0x265   : > { %v789_v38 = vadd.f32 %v780_v37, %v702_v63  ;;  %v741_v40 = vpop.f32.mrb[9].mxu0  ;;  %v782_v42 = vpop.f32.mrb[9].mxu1  ;;  %v787_v52 = vadd.f32 %v739_v35, %v700_v34 }
 0x266   : > { %v788_v44 = vadd.f32 %v741_v40, %v701_v0  ;;  %v743_v45 = vpop.f32.mrb[10].mxu0  ;;  %v784_v46 = vpop.f32.mrb[10].mxu1  ;;  %v790_v53 = vadd.f32 %v782_v42, %v703_v51  ;;  %v1643_v42 = vld [vmem:[%s2374_s27 + $0x30] sm:$0xff] }
 0x267   : > { %v793_v47 = vmul.f32 0.5, %v789_v38  ;;  %v744_v48 = vpop.f32.mrb[11].mxu0  ;;  %v785_v49 = vpop.f32.mrb[11].mxu1  ;;  %v1644_v38 = vld [vmem:[%s2374_s27 + $0x38] sm:$0xff]  ;;  %v817_v45 = vunpack.c.h.bf16 %v1643_v42 }
 0x268   : > { %v792_v50 = vmul.f32 0.5, %v788_v44  ;;  %v794_v54 = vmul.f32 0.5, %v790_v53  ;;  %v818_v34 = vunpack.c.l.bf16 %v1644_v38 }
 0x269   : > { %1905 = vtanh.f32 %v793_v47 }
 0x26a   : > { %1907 = vtanh.f32 %v792_v50 }
 0x26b   : > { %1909 = vtanh.f32 %v787_v52  ;;  %v816_v52 = vunpack.c.l.bf16 %v1643_v42 }
 0x26c   : > { %1911 = vtanh.f32 %v794_v54 }
 0x273   : > { %v1906_v56 = vpop.eup %1905 }
 0x274   : > { %v1908_v57 = vpop.eup %1907  ;;  %v799_v58 = vadd.f32 1.0, %v1906_v56 }
 0x275   : > { %v798_v59 = vadd.f32 1.0, %v1908_v57  ;;  %v1910_v36 = vpop.eup %1909 }
 0x276   : > { %v802_v60 = vmul.f32 0.5, %v799_v58  ;;  %v1912_v40 = vpop.eup %1911 }
 0x277   : > { %v801_v62 = vmul.f32 0.5, %v798_v59  ;;  %v800_v44 = vadd.f32 1.0, %v1912_v40 }
 0x278   : > { %v805_v63 = vmul.f32 %v802_v60, %v2573_v43 }
 0x279   : > { %v804_v0 = vmul.f32 %v1910_v36, %v801_v62  ;;  %v803_v51 = vmul.f32 0.5, %v800_v44  ;;  %v819_v36 = vunpack.c.h.bf16 %v1644_v38 }
 0x27b   : > { %v806_v35 = vadd.f32 %v805_v63, %v804_v0 }
 0x27d   : > { %1913 = vtanh.f32 %v806_v35  ;;  %v2673_v37 = vsel %vm813_vm1, %v806_v35, %v2573_v43 }
 0x284   : > { %v855_v46 = vpop.f32.mrb[12].mxu0  ;;  %v896_v47 = vpop.f32.mrb[12].mxu1 }
 0x285   : > { %v905_v48 = vadd.f32 %v896_v47, %v818_v34  ;;  %v857_v49 = vpop.f32.mrb[13].mxu0  ;;  %v898_v50 = vpop.f32.mrb[13].mxu1  ;;  %v903_v63 = vadd.f32 %v855_v46, %v816_v52 }
 0x286   : > { %v904_v53 = vadd.f32 %v857_v49, %v817_v45  ;;  %v859_v54 = vpop.f32.mrb[14].mxu0  ;;  %v900_v56 = vpop.f32.mrb[14].mxu1  ;;  %v906_v40 = vadd.f32 %v898_v50, %v819_v36 }
 0x287   : > { %v1914_v57 = vpop.eup %1913  ;;  %v909_v58 = vmul.f32 0.5, %v905_v48  ;;  %v860_v43 = vpop.f32.mrb[15].mxu0 }
 0x288   : > { %v901_v59 = vpop.f32.mrb[15].mxu1  ;;  %v808_v60 = vmul.f32 %v1914_v57, %v803_v51  ;;  %v908_v62 = vmul.f32 0.5, %v904_v53 }
 0x289   : > { %1915 = vtanh.f32 %v909_v58  ;;  %v1647_v59 = vld [vmem:[%s2374_s27 + $0x50] sm:$0xff] }
 0x28a   : > { %1917 = vtanh.f32 %v908_v62  ;;  %v2680_v0 = vsel %vm813_vm1, %v808_v60, %v2580_v39  ;;  %v910_v39 = vmul.f32 0.5, %v906_v40  ;;  %v1050_v60 = vunpack.c.l.bf16 %v1648_v41 }
 0x28b   : > { %v936_v35 = vpack.c.bf16 %v2680_v0, %v2680_v0  ;;  %1919 = vtanh.f32 %v903_v63  ;;  %v1049_v36 = vunpack.c.h.bf16 %v1647_v59 }
 0x28c   : > { %1921 = vtanh.f32 %v910_v39 }
 0x28d   : > { %970 = vmatmul.mubr.bf16.vlgmr.msra.gmra.mrb[16].mxu0 %v936_v35  ;;  %1011 = vmatmul.mubr.bf16.vlgmr.msra.gmra.mrb[16].mxu1 %v936_v35 }
 0x28e   : > { %1054 = vmatpush1.bf16.msra.mxu0 %v2392_v4  ;;  %1095 = vmatpush1.bf16.msra.mxu1 %v2394_v5 }
 0x28f   : > { %1055 = vmatprep.subr.bf16.mxu0 %v2397_v6  ;;  %1096 = vmatprep.subr.bf16.mxu1 %v2401_v7 }
 0x290   : > { %1085 = vmatprep.mubr.bf16.mxu0 %v2175_v3  ;;  %1126 = vmatprep.mubr.bf16.mxu1 %v2175_v3 }
 0x292   : > { %1056 = vmatpush1.bf16.msra.mxu0 %v2403_v8  ;;  %1097 = vmatpush1.bf16.msra.mxu1 %v2406_v9 }
 0x293   : > { %v1916_v38 = vpop.eup %1915  ;;  %1057 = vmatprep.subr.bf16.mxu0 %v2409_v10  ;;  %1098 = vmatprep.subr.bf16.mxu1 %v2411_v11 }
 0x294   : > { %v1918_v42 = vpop.eup %1917  ;;  %v915_v34 = vadd.f32 1.0, %v1916_v38 }
 0x295   : > { %v914_v44 = vadd.f32 1.0, %v1918_v42  ;;  %v1920_v47 = vpop.eup %1919 }
 0x296   : > { %v918_v45 = vmul.f32 0.5, %v915_v34  ;;  %1058 = vmatpush1.bf16.msra.mxu0 %v2413_v12  ;;  %1099 = vmatpush1.bf16.msra.mxu1 %v2415_v13  ;;  %v1922_v52 = vpop.eup %1921  ;;  %v1048_v34 = vunpack.c.l.bf16 %v1647_v59  ;;  %v1986_v59 = vld [vmem:[#allocation7 + $0xa8] ss:$16 sps:$4 sm:$0xff]  }
 0x297   : > { %v917_v46 = vmul.f32 0.5, %v914_v44  ;;  %1059 = vmatprep.subr.bf16.mxu0 %v2419_v14  ;;  %1100 = vmatprep.subr.bf16.mxu1 %v2423_v15  ;;  %v916_v53 = vadd.f32 1.0, %v1922_v52 }
 0x298   : > { %v921_v48 = vmul.f32 %v918_v45, %v2604_v55 }
 0x299   : > { %v920_v49 = vmul.f32 %v1920_v47, %v917_v46 }
 0x29a   : > { %1060 = vmatpush1.bf16.msra.mxu0 %v2425_v16  ;;  %1101 = vmatpush1.bf16.msra.mxu1 %v2429_v17 }
 0x29b   : > { %v922_v50 = vadd.f32 %v921_v48, %v920_v49  ;;  %1061 = vmatprep.subr.bf16.mxu0 %v2431_v18  ;;  %1102 = vmatprep.subr.bf16.mxu1 %v2435_v19 }
 0x29d   : > { %1923 = vtanh.f32 %v922_v50  ;;  %v2706_v51 = vsel %vm813_vm1, %v922_v50, %v2604_v55  ;;  %v919_v55 = vmul.f32 0.5, %v916_v53  ;;  %v1051_v53 = vunpack.c.h.bf16 %v1648_v41 }
 0x29e   : > { %1062 = vmatpush1.bf16.msra.mxu0 %v2437_v20  ;;  %1103 = vmatpush1.bf16.msra.mxu1 %v2439_v21 }
 0x29f   : > { %1063 = vmatprep.subr.bf16.mxu0 %v2443_v22  ;;  %1104 = vmatprep.subr.bf16.mxu1 %v2447_v23 }
 0x2a2   : > { %1064 = vmatpush1.bf16.msra.mxu0 %v2451_v24  ;;  %1105 = vmatpush1.bf16.msra.mxu1 %v2453_v25 }
 0x2a3   : > { %1065 = vmatprep.subr.bf16.mxu0 %v2457_v26  ;;  %1106 = vmatprep.subr.bf16.mxu1 %v2459_v27 }
 0x2a6   : > { %1066 = vmatpush1.bf16.msra.mxu0 %v2463_v28  ;;  %1107 = vmatpush1.bf16.msra.mxu1 %v2465_v29 }
 0x2a7   : > { %v1924_v54 = vpop.eup %1923  ;;  %1067 = vmatprep.subr.bf16.mxu0 %v2469_v30  ;;  %1108 = vmatprep.subr.bf16.mxu1 %v2471_v31 }
 0x2a8   : > { %v924_v56 = vmul.f32 %v1924_v54, %v919_v55 }
 0x2aa   : > { %1068 = vmatpush1.bf16.msra.mxu0 %v2475_v32  ;;  %1109 = vmatpush1.bf16.msra.mxu1 %v2477_v33  ;;  %v2725_v57 = vsel %vm813_vm1, %v924_v56, %v2623_v61 }
 0x2ab   : > { %v1052_v58 = vpack.c.bf16 %v2725_v57, %v2725_v57  ;;  %1169 = vmatprep.subr.bf16.mxu0 %v2385_v1  ;;  %1210 = vmatprep.subr.bf16.mxu1 %v2387_v2 }
 0x2ad   : > { %1086 = vmatmul.mubr.bf16.vlgmr.msra.gmra.mrb[20].mxu0 %v1052_v58  ;;  %1127 = vmatmul.mubr.bf16.vlgmr.msra.gmra.mrb[20].mxu1 %v1052_v58 }
 0x2ae   : > { %1170 = vmatpush1.bf16.msra.mxu0 %v2392_v4  ;;  %1211 = vmatpush1.bf16.msra.mxu1 %v2394_v5  ;;  %v1646_v4 = vld [vmem:[%s2374_s27 + $0x48] sm:$0xff]  ;;  %v1645_v5 = vld [vmem:[%s2374_s27 + $0x40] sm:$0xff] }
 0x2af   : > { %1171 = vmatprep.subr.bf16.mxu0 %v2397_v6  ;;  %1212 = vmatprep.subr.bf16.mxu1 %v2401_v7  ;;  %v934_v6 = vunpack.c.l.bf16 %v1646_v4  ;;  %v933_v7 = vunpack.c.h.bf16 %v1645_v5 }
 0x2b0   : > { %1201 = vmatprep.mubr.bf16.mxu0 %v2175_v3  ;;  %1242 = vmatprep.mubr.bf16.mxu1 %v2175_v3 }
 0x2b2   : > { %1172 = vmatpush1.bf16.msra.mxu0 %v2403_v8  ;;  %1213 = vmatpush1.bf16.msra.mxu1 %v2406_v9 }
 0x2b3   : > { %1173 = vmatprep.subr.bf16.mxu0 %v2409_v10  ;;  %1214 = vmatprep.subr.bf16.mxu1 %v2411_v11 }
 0x2b6   : > { %1174 = vmatpush1.bf16.msra.mxu0 %v2413_v12  ;;  %1215 = vmatpush1.bf16.msra.mxu1 %v2415_v13  ;;  %v932_v13 = vunpack.c.l.bf16 %v1645_v5  ;;  %v1966_v5 = vld [vmem:[#allocation7 + $0x8] ss:$16 sps:$4 sm:$0xff]  }
 0x2b7   : > { %1175 = vmatprep.subr.bf16.mxu0 %v2419_v14  ;;  %1216 = vmatprep.subr.bf16.mxu1 %v2423_v15 }
 0x2ba   : > { %1176 = vmatpush1.bf16.msra.mxu0 %v2425_v16  ;;  %1217 = vmatpush1.bf16.msra.mxu1 %v2429_v17 }
 0x2bb   : > { %1177 = vmatprep.subr.bf16.mxu0 %v2431_v18  ;;  %1218 = vmatprep.subr.bf16.mxu1 %v2435_v19 }
 0x2be   : > { %1178 = vmatpush1.bf16.msra.mxu0 %v2437_v20  ;;  %1219 = vmatpush1.bf16.msra.mxu1 %v2439_v21 }
 0x2bf   : > { %1179 = vmatprep.subr.bf16.mxu0 %v2443_v22  ;;  %1220 = vmatprep.subr.bf16.mxu1 %v2447_v23 }
 0x2c2   : > { %1180 = vmatpush1.bf16.msra.mxu0 %v2451_v24  ;;  %1221 = vmatpush1.bf16.msra.mxu1 %v2453_v25 }
 0x2c3   : > { %1181 = vmatprep.subr.bf16.mxu0 %v2457_v26  ;;  %1222 = vmatprep.subr.bf16.mxu1 %v2459_v27 }
 0x2c6   : > { %1182 = vmatpush1.bf16.msra.mxu0 %v2463_v28  ;;  %1223 = vmatpush1.bf16.msra.mxu1 %v2465_v29  ;;  %v2768_v29 = vstv %s1043_s8 }
 0x2c7   : > { %1183 = vmatprep.subr.bf16.mxu0 %v2469_v30  ;;  %1224 = vmatprep.subr.bf16.mxu1 %v2471_v31  ;;  %vm1045_vm2 = vcmp.eq.s32.totalorder %v2768_v29, 1 }
 0x2ca   : > { %1184 = vmatpush1.bf16.msra.mxu0 %v2475_v32  ;;  %1225 = vmatpush1.bf16.msra.mxu1 %v2477_v33 }
 0x2cb   : > { %1285 = vmatprep.subr.bf16.mxu0 %v2385_v1  ;;  %1326 = vmatprep.subr.bf16.mxu1 %v2387_v2  ;;  %v935_v2 = vunpack.c.h.bf16 %v1646_v4  ;;  %v1965_v4 = vld [vmem:[#allocation7] ss:$16 sps:$4 sm:$0xff]  }
 0x360   : > { %v971_v8 = vpop.f32.mrb[16].mxu0  ;;  %v1012_v9 = vpop.f32.mrb[16].mxu1 }
 0x361   : > { %v1021_v10 = vadd.f32 %v1012_v9, %v934_v6  ;;  %v973_v11 = vpop.f32.mrb[17].mxu0  ;;  %v1014_v12 = vpop.f32.mrb[17].mxu1  ;;  %v1019_v20 = vadd.f32 %v971_v8, %v932_v13  ;;  %v1967_v6 = vld [vmem:[#allocation7 + $0x24] ss:$16 sps:$4 sm:$0xff]   ;;  %v1969_v8 = vld [vmem:[#allocation7 + $0x20] ss:$16 sps:$4 sm:$0xff]  }
 0x362   : > { %v1020_v14 = vadd.f32 %v973_v11, %v933_v7  ;;  %v975_v15 = vpop.f32.mrb[18].mxu0  ;;  %v1016_v16 = vpop.f32.mrb[18].mxu1  ;;  %v1022_v21 = vadd.f32 %v1014_v12, %v935_v2  ;;  %v1968_v7 = vld [vmem:[#allocation7 + $0x2c] ss:$16 sps:$4 sm:$0xff]   ;;  %v1970_v9 = vld [vmem:[#allocation7 + $0x28] ss:$16 sps:$4 sm:$0xff]  }
 0x363   : > { %v1025_v17 = vmul.f32 0.5, %v1021_v10  ;;  %v976_v18 = vpop.f32.mrb[19].mxu0  ;;  %v1017_v19 = vpop.f32.mrb[19].mxu1  ;;  %v1971_v11 = vld [vmem:[#allocation7 + $0x44] ss:$16 sps:$4 sm:$0xff]  }
 0x364   : > { %v1024_v1 = vmul.f32 0.5, %v1020_v14  ;;  %v1026_v22 = vmul.f32 0.5, %v1022_v21  ;;  %v1972_v12 = vld [vmem:[#allocation7 + $0x4c] ss:$16 sps:$4 sm:$0xff]   ;;  %v1974_v18 = vld [vmem:[#allocation7 + $0x48] ss:$16 sps:$4 sm:$0xff]  }
 0x365   : > { %1925 = vtanh.f32 %v1025_v17  ;;  %v1973_v17 = vld [vmem:[#allocation7 + $0x40] ss:$16 sps:$4 sm:$0xff]   ;;  %v1975_v19 = vld [vmem:[#allocation7 + $0x64] ss:$16 sps:$4 sm:$0xff]  }
 0x366   : > { %1927 = vtanh.f32 %v1024_v1  ;;  %v1976_v1 = vld [vmem:[#allocation7 + $0x6c] ss:$16 sps:$4 sm:$0xff]  }
 0x367   : > { %1929 = vtanh.f32 %v1019_v20 }
 0x368   : > { %1931 = vtanh.f32 %v1026_v22  ;;  %v1977_v22 = vld [vmem:[#allocation7 + $0x60] ss:$16 sps:$4 sm:$0xff]  }
 0x36f   : > { %v1926_v23 = vpop.eup %1925 }
 0x370   : > { %v1928_v24 = vpop.eup %1927  ;;  %v1031_v25 = vadd.f32 1.0, %v1926_v23  ;;  %v1978_v23 = vld [vmem:[#allocation7 + $0x68] ss:$16 sps:$4 sm:$0xff]  }
 0x371   : > { %v1030_v26 = vadd.f32 1.0, %v1928_v24  ;;  %v1930_v30 = vpop.eup %1929 }
 0x372   : > { %v1034_v27 = vmul.f32 0.5, %v1031_v25  ;;  %v1932_v43 = vpop.eup %1931  ;;  %v1979_v25 = vld [vmem:[#allocation7 + $0x84] ss:$16 sps:$4 sm:$0xff]  }
 0x373   : > { %v1033_v28 = vmul.f32 0.5, %v1030_v26  ;;  %v1032_v62 = vadd.f32 1.0, %v1932_v43  ;;  %v1980_v26 = vld [vmem:[#allocation7 + $0x8c] ss:$16 sps:$4 sm:$0xff]   ;;  %v1985_v43 = vld [vmem:[#allocation7 + $0xa0] ss:$16 sps:$4 sm:$0xff]  }
 0x374   : > { %v1037_v31 = vmul.f32 %v1034_v27, %v2673_v37 }
 0x375   : > { %v1036_v32 = vmul.f32 %v1930_v30, %v1033_v28  ;;  %v1035_v42 = vmul.f32 0.5, %v1032_v62  ;;  %v1981_v28 = vld [vmem:[#allocation7 + $0x80] ss:$16 sps:$4 sm:$0xff]   ;;  %v1982_v30 = vld [vmem:[#allocation7 + $0x88] ss:$16 sps:$4 sm:$0xff]  }
 0x376   : > { %v1988_v62 = vld [vmem:[#allocation7 + $0xcc] ss:$16 sps:$4 sm:$0xff]  }
 0x377   : > { %v1038_v33 = vadd.f32 %v1037_v31, %v1036_v32  ;;  %v1983_v32 = vld [vmem:[#allocation7 + $0xa4] ss:$16 sps:$4 sm:$0xff]  }
 0x379   : > { %1933 = vtanh.f32 %v1038_v33  ;;  %v2775_v61 = vsel %vm1045_vm2, %v1038_v33, %v2673_v37  ;;  %v1984_v33 = vld [vmem:[#allocation7 + $0xac] ss:$16 sps:$4 sm:$0xff]  }
 0x380   : > { %v1087_v63 = vpop.f32.mrb[20].mxu0  ;;  %v1128_v35 = vpop.f32.mrb[20].mxu1 }
 0x381   : > { %v1137_v40 = vadd.f32 %v1128_v35, %v1050_v60  ;;  %v1089_v39 = vpop.f32.mrb[21].mxu0  ;;  %v1130_v38 = vpop.f32.mrb[21].mxu1  ;;  %v1135_v55 = vadd.f32 %v1087_v63, %v1048_v34  ;;  %v1987_v60 = vld [vmem:[#allocation7 + $0xc4] ss:$16 sps:$4 sm:$0xff]   ;;  %v1990_v63 = vld [vmem:[#allocation7 + $0xc8] ss:$16 sps:$4 sm:$0xff]  }
 0x382   : > { %v1136_v44 = vadd.f32 %v1089_v39, %v1049_v36  ;;  %v1091_v45 = vpop.f32.mrb[22].mxu0  ;;  %v1132_v46 = vpop.f32.mrb[22].mxu1  ;;  %v1138_v58 = vadd.f32 %v1130_v38, %v1051_v53  ;;  %v1989_v36 = vld [vmem:[#allocation7 + $0xc0] ss:$16 sps:$4 sm:$0xff]   ;;  %v1992_v39 = vld [vmem:[#allocation7 + $0xec] ss:$16 sps:$4 sm:$0xff]  }
 0x383   : > { %v1934_v47 = vpop.eup %1933  ;;  %v1141_v48 = vmul.f32 0.5, %v1137_v40  ;;  %v1092_v37 = vpop.f32.mrb[23].mxu0  ;;  %v1991_v40 = vld [vmem:[#allocation7 + $0xe4] ss:$16 sps:$4 sm:$0xff]   ;;  %v1994_v34 = vld [vmem:[#allocation7 + $0xe8] ss:$16 sps:$4 sm:$0xff]  }
 0x384   : > { %v1133_v49 = vpop.f32.mrb[23].mxu1  ;;  %v1040_v50 = vmul.f32 %v1934_v47, %v1035_v42  ;;  %v1140_v52 = vmul.f32 0.5, %v1136_v44  ;;  %v1993_v42 = vld [vmem:[#allocation7 + $0xe0] ss:$16 sps:$4 sm:$0xff]   ;;  %v1650_v46 = vld [vmem:[%s2374_s27 + $0x68] sm:$0xff] }
 0x385   : > { %1935 = vtanh.f32 %v1141_v48  ;;  %v1649_v47 = vld [vmem:[%s2374_s27 + $0x60] sm:$0xff]  ;;  %v1166_v48 = vunpack.c.l.bf16 %v1650_v46 }
 0x386   : > { %1937 = vtanh.f32 %v1140_v52  ;;  %v2782_v54 = vsel %vm1045_vm2, %v1040_v50, %v2680_v0  ;;  %v1142_v0 = vmul.f32 0.5, %v1138_v58  ;;  %v1165_v37 = vunpack.c.h.bf16 %v1649_v47 }
 0x387   : > { %v1168_v56 = vpack.c.bf16 %v2782_v54, %v2782_v54  ;;  %1939 = vtanh.f32 %v1135_v55 }
 0x388   : > { %1941 = vtanh.f32 %v1142_v0  ;;  %v1167_v0 = vunpack.c.h.bf16 %v1650_v46 }
 0x389   : > { %1202 = vmatmul.mubr.bf16.vlgmr.msra.gmra.mrb[24].mxu0 %v1168_v56  ;;  %1243 = vmatmul.mubr.bf16.vlgmr.msra.gmra.mrb[24].mxu1 %v1168_v56  ;;  %v1164_v56 = vunpack.c.l.bf16 %v1649_v47 }
 0x38a   : > { %1286 = vmatpush1.bf16.msra.mxu0 %v1965_v4  ;;  %1327 = vmatpush1.bf16.msra.mxu1 %v1966_v5 }
 0x38b   : > { %1287 = vmatprep.subr.bf16.mxu0 %v1967_v6  ;;  %1328 = vmatprep.subr.bf16.mxu1 %v1968_v7 }
 0x38c   : > { %1317 = vmatprep.mubr.bf16.mxu0 %v2175_v3  ;;  %1358 = vmatprep.mubr.bf16.mxu1 %v2175_v3 }
 0x38e   : > { %1288 = vmatpush1.bf16.msra.mxu0 %v1969_v8  ;;  %1329 = vmatpush1.bf16.msra.mxu1 %v1970_v9 }
 0x38f   : > { %v1936_v10 = vpop.eup %1935  ;;  %1289 = vmatprep.subr.bf16.mxu0 %v1971_v11  ;;  %1330 = vmatprep.subr.bf16.mxu1 %v1972_v12 }
 0x390   : > { %v1938_v13 = vpop.eup %1937  ;;  %v1147_v14 = vadd.f32 1.0, %v1936_v10 }
 0x391   : > { %v1146_v15 = vadd.f32 1.0, %v1938_v13  ;;  %v1940_v2 = vpop.eup %1939 }
 0x392   : > { %v1150_v16 = vmul.f32 0.5, %v1147_v14  ;;  %1290 = vmatpush1.bf16.msra.mxu0 %v1973_v17  ;;  %1331 = vmatpush1.bf16.msra.mxu1 %v1974_v18  ;;  %v1942_v31 = vpop.eup %1941  ;;  %v1276_v17 = vstv %s1275_s10 }
 0x393   : > { %v1149_v3 = vmul.f32 0.5, %v1146_v15  ;;  %1291 = vmatprep.subr.bf16.mxu0 %v1975_v19  ;;  %1332 = vmatprep.subr.bf16.mxu1 %v1976_v1  ;;  %v1148_v41 = vadd.f32 1.0, %v1942_v31  ;;  %vm1277_vm3 = vcmp.eq.s32.totalorder %v1276_v17, 1 }
 0x394   : > { %v1153_v20 = vmul.f32 %v1150_v16, %v2706_v51 }
 0x395   : > { %v1152_v21 = vmul.f32 %v1940_v2, %v1149_v3 }
 0x396   : > { %1292 = vmatpush1.bf16.msra.mxu0 %v1977_v22  ;;  %1333 = vmatpush1.bf16.msra.mxu1 %v1978_v23  ;;  %v1651_v22 = vld [vmem:[%s2374_s27 + $0x70] sm:$0xff] }
 0x397   : > { %v1154_v24 = vadd.f32 %v1153_v20, %v1152_v21  ;;  %1293 = vmatprep.subr.bf16.mxu0 %v1979_v25  ;;  %1334 = vmatprep.subr.bf16.mxu1 %v1980_v26  ;;  %v1652_v20 = vld [vmem:[%s2374_s27 + $0x78] sm:$0xff]  ;;  %v1281_v25 = vunpack.c.h.bf16 %v1651_v22 }
 0x398   : > { %v1282_v23 = vunpack.c.l.bf16 %v1652_v20 }
 0x399   : > { %1943 = vtanh.f32 %v1154_v24  ;;  %v2792_v27 = vsel %vm1045_vm2, %v1154_v24, %v2706_v51  ;;  %v1151_v51 = vmul.f32 0.5, %v1148_v41  ;;  %v1280_v41 = vunpack.c.l.bf16 %v1651_v22  ;;  %v1414_v22 = vld [vmem:[#allocation9 + $0x78] sm:$0xff] (!%p1653_p8) }
 0x39a   : > { %1294 = vmatpush1.bf16.msra.mxu0 %v1981_v28  ;;  %1335 = vmatpush1.bf16.msra.mxu1 %v1982_v30 }
 0x39b   : > { %1295 = vmatprep.subr.bf16.mxu0 %v1983_v32  ;;  %1336 = vmatprep.subr.bf16.mxu1 %v1984_v33 }
 0x39e   : > { %1296 = vmatpush1.bf16.msra.mxu0 %v1985_v43  ;;  %1337 = vmatpush1.bf16.msra.mxu1 %v1986_v59 }
 0x39f   : > { %1297 = vmatprep.subr.bf16.mxu0 %v1987_v60  ;;  %1338 = vmatprep.subr.bf16.mxu1 %v1988_v62 }
 0x3a2   : > { %1298 = vmatpush1.bf16.msra.mxu0 %v1989_v36  ;;  %1339 = vmatpush1.bf16.msra.mxu1 %v1990_v63 }
 0x3a3   : > { %v1944_v35 = vpop.eup %1943  ;;  %1299 = vmatprep.subr.bf16.mxu0 %v1991_v40  ;;  %1340 = vmatprep.subr.bf16.mxu1 %v1992_v39  ;;  %v1283_v40 = vunpack.c.h.bf16 %v1652_v20 }
 0x3a4   : > { %v1156_v38 = vmul.f32 %v1944_v35, %v1151_v51 }
 0x3a6   : > { %1300 = vmatpush1.bf16.msra.mxu0 %v1993_v42  ;;  %1341 = vmatpush1.bf16.msra.mxu1 %v1994_v34  ;;  %v2797_v44 = vsel %vm1045_vm2, %v1156_v38, %v2725_v57 }
 0x3a7   : > { %v1284_v45 = vpack.c.bf16 %v2797_v44, %v2797_v44 }
 0x3a9   : > { %1318 = vmatmul.mubr.bf16.vlgmr.msra.gmra.mrb[28].mxu0 %v1284_v45  ;;  %1359 = vmatmul.mubr.bf16.vlgmr.msra.gmra.mrb[28].mxu1 %v1284_v45 }
 0x45c   : > { %v1203_v49 = vpop.f32.mrb[24].mxu0  ;;  %v1244_v50 = vpop.f32.mrb[24].mxu1 }
 0x45d   : > { %v1253_v52 = vadd.f32 %v1244_v50, %v1166_v48  ;;  %v1205_v53 = vpop.f32.mrb[25].mxu0  ;;  %v1246_v55 = vpop.f32.mrb[25].mxu1  ;;  %v1251_v8 = vadd.f32 %v1203_v49, %v1164_v56 }
 0x45e   : > { %v1252_v58 = vadd.f32 %v1205_v53, %v1165_v37  ;;  %v1207_v29 = vpop.f32.mrb[26].mxu0  ;;  %v1248_v57 = vpop.f32.mrb[26].mxu1  ;;  %v1254_v9 = vadd.f32 %v1246_v55, %v1167_v0  ;;  %v1401_v0 = vld [vmem:[#allocation9 + $0x10] sm:$0xff] (!%p1653_p8) }
 0x45f   : > { %v1257_v4 = vmul.f32 0.5, %v1253_v52  ;;  %v1208_v5 = vpop.f32.mrb[27].mxu0  ;;  %v1249_v6 = vpop.f32.mrb[27].mxu1 }
 0x460   : > { %v1256_v7 = vmul.f32 0.5, %v1252_v58  ;;  %v1258_v10 = vmul.f32 0.5, %v1254_v9  ;;  %v1399_v6 = vld [vmem:[#allocation9] sm:$0xff] (!%p1653_p8)  ;;  %v1402_v9 = vld [vmem:[#allocation9 + $0x18] sm:$0xff] (!%p1653_p8) }
 0x461   : > { %1945 = vtanh.f32 %v1257_v4 }
 0x462   : > { %1947 = vtanh.f32 %v1256_v7  ;;  %v1400_v7 = vld [vmem:[#allocation9 + $0x8] sm:$0xff] (!%p1653_p8) }
 0x463   : > { %1949 = vtanh.f32 %v1251_v8  ;;  %v1714_v8 = vpack.c.bf16 (!%p1653_p8), %v1400_v7, %v1399_v6 }
 0x464   : > { %1951 = vtanh.f32 %v1258_v10  ;;  %v1403_v10 = vld [vmem:[#allocation9 + $0x20] sm:$0xff] (!%p1653_p8) }
 0x465   : > { %1715 = vmatprep.subr.bf16.mxu0 (!%p1653_p8), %v1714_v8 }
 0x466   : > { %1717 = vmatpush3.bf16.msra.mxu0 (!%p1653_p8), %v1714_v8 }
 0x46b   : > { %v1946_v11 = vpop.eup %1945 }
 0x46c   : > { %v1948_v12 = vpop.eup %1947  ;;  %v1263_v13 = vadd.f32 1.0, %v1946_v11  ;;  %v1404_v11 = vld [vmem:[#allocation9 + $0x28] sm:$0xff] (!%p1653_p8) }
 0x46d   : > { %v1262_v14 = vadd.f32 1.0, %v1948_v12  ;;  %v1950_v18 = vpop.eup %1949  ;;  %v1722_v12 = vpack.c.bf16 (!%p1653_p8), %v1404_v11, %v1403_v10 }
 0x46e   : > { %v1266_v15 = vmul.f32 0.5, %v1263_v13  ;;  %v1952_v21 = vpop.eup %1951  ;;  %v1405_v13 = vld [vmem:[#allocation9 + $0x30] sm:$0xff] (!%p1653_p8) }
 0x46f   : > { %v1265_v16 = vmul.f32 0.5, %v1262_v14  ;;  %v1264_v24 = vadd.f32 1.0, %v1952_v21  ;;  %v1406_v14 = vld [vmem:[#allocation9 + $0x38] sm:$0xff] (!%p1653_p8)  ;;  %v1413_v21 = vld [vmem:[#allocation9 + $0x70] sm:$0xff] (!%p1653_p8) }
 0x470   : > { %v1269_v3 = vmul.f32 %v1266_v15, %v2775_v61  ;;  %v1407_v15 = vld [vmem:[#allocation9 + $0x40] sm:$0xff] (!%p1653_p8) }
 0x471   : > { %v1268_v19 = vmul.f32 %v1950_v18, %v1265_v16  ;;  %v1267_v33 = vmul.f32 0.5, %v1264_v24  ;;  %v1408_v16 = vld [vmem:[#allocation9 + $0x48] sm:$0xff] (!%p1653_p8)  ;;  %v1409_v18 = vld [vmem:[#allocation9 + $0x50] sm:$0xff] (!%p1653_p8)  ;;  %v1654_v24 = vld [vmem:[%s2869_s3] ss:$0 sm:$0xff] (!%p1653_p8) }
 0x472   : > { %v1730_v17 = vpack.c.bf16 (!%p1653_p8), %v1408_v16, %v1407_v15 }
 0x473   : > { %v1270_v1 = vadd.f32 %v1269_v3, %v1268_v19  ;;  %v1410_v3 = vld [vmem:[#allocation9 + $0x58] sm:$0xff] (!%p1653_p8) }
 0x474   : > { %v1734_v19 = vpack.c.bf16 (!%p1653_p8), %v1410_v3, %v1409_v18 }
 0x475   : > { %1953 = vtanh.f32 %v1270_v1  ;;  %v1279_v2 = vsel %vm1277_vm3, %v1270_v1, %v2775_v61  ;;  %v1411_v1 = vld [vmem:[#allocation9 + $0x60] sm:$0xff] (!%p1653_p8) }
 0x476   : > { %1393 = vst [vmem:[#allocation3] sm:$0xff] %v1279_v2  ;;  %v1412_v2 = vld [vmem:[#allocation9 + $0x68] sm:$0xff] (!%p1653_p8) }
 0x477   : > { %v1738_v20 = vpack.c.bf16 (!%p1653_p8), %v1412_v2, %v1411_v1 }
 0x47c   : > { %v1319_v26 = vpop.f32.mrb[28].mxu0  ;;  %v1360_v28 = vpop.f32.mrb[28].mxu1 }
 0x47d   : > { %v1369_v30 = vadd.f32 %v1360_v28, %v1282_v23  ;;  %v1321_v31 = vpop.f32.mrb[29].mxu0  ;;  %v1362_v32 = vpop.f32.mrb[29].mxu1  ;;  %v1367_v38 = vadd.f32 %v1319_v26, %v1280_v41  ;;  %v1742_v23 = vpack.c.bf16 (!%p1653_p8), %v1414_v22, %v1413_v21 }
 0x47e   : > { %v1368_v43 = vadd.f32 %v1321_v31, %v1281_v25  ;;  %v1323_v59 = vpop.f32.mrb[30].mxu0  ;;  %v1364_v60 = vpop.f32.mrb[30].mxu1  ;;  %v1370_v42 = vadd.f32 %v1362_v32, %v1283_v40 }
 0x47f   : > { %v1954_v62 = vpop.eup %1953  ;;  %v1373_v51 = vmul.f32 0.5, %v1369_v30  ;;  %v1324_v61 = vpop.f32.mrb[31].mxu0 }
 0x480   : > { %v1365_v36 = vpop.f32.mrb[31].mxu1  ;;  %v1272_v63 = vmul.f32 %v1954_v62, %v1267_v33  ;;  %v1372_v35 = vmul.f32 0.5, %v1368_v43  ;;  %v1374_v34 = vmul.f32 0.5, %v1370_v42 }
 0x481   : > { %1955 = vtanh.f32 %v1373_v51 }
 0x482   : > { %v1278_v39 = vsel %vm1277_vm3, %v1272_v63, %v2782_v54  ;;  %1957 = vtanh.f32 %v1372_v35 }
 0x483   : > { %1391 = vst [vmem:[#allocation2] sm:$0xff] %v1278_v39  ;;  %1959 = vtanh.f32 %v1367_v38  ;;  %1711 = vmatprep.mubr.f32.mxu0 (!%p1653_p8), %v1278_v39 }
 0x484   : > { %1961 = vtanh.f32 %v1374_v34 }
 0x48b   : > { %v1956_v45 = vpop.eup %1955 }
 0x48c   : > { %v1958_v46 = vpop.eup %1957  ;;  %v1379_v47 = vadd.f32 1.0, %v1956_v45 }
 0x48d   : > { %v1378_v48 = vadd.f32 1.0, %v1958_v46  ;;  %v1960_v50 = vpop.eup %1959 }
 0x48e   : > { %v1382_v37 = vmul.f32 0.5, %v1379_v47  ;;  %v1962_v56 = vpop.eup %1961 }
 0x48f   : > { %v1381_v49 = vmul.f32 0.5, %v1378_v48  ;;  %v1380_v58 = vadd.f32 1.0, %v1962_v56 }
 0x490   : > { %v1385_v52 = vmul.f32 %v1382_v37, %v2792_v27 }
 0x491   : > { %v1384_v53 = vmul.f32 %v1960_v50, %v1381_v49  ;;  %v1383_v29 = vmul.f32 0.5, %v1380_v58 }
 0x493   : > { %v1386_v55 = vadd.f32 %v1385_v52, %v1384_v53 }
 0x495   : > { %1963 = vtanh.f32 %v1386_v55  ;;  %v1390_v54 = vsel %vm1277_vm3, %v1386_v55, %v2792_v27  ;;  %v1718_v27 = vpack.c.bf16 (!%p1653_p8), %v1402_v9, %v1401_v0 }
 0x496   : > { %1394 = vst [vmem:[#allocation3 + $0x8] sm:$0xff] %v1390_v54 }
 0x497   : > { %1719 = vmatprep.subr.bf16.mxu0 (!%p1653_p8), %v1718_v27 }
 0x498   : > { %1721 = vmatpush3.bf16.msra.mxu0 (!%p1653_p8), %v1718_v27 }
 0x499   : > { %1723 = vmatprep.subr.bf16.mxu0 (!%p1653_p8), %v1722_v12 }
 0x49c   : > { %1725 = vmatpush3.bf16.msra.mxu0 (!%p1653_p8), %v1722_v12 }
 0x49d   : > { %1398 = sbr.rel (%p1653_p8) target bundleno = 1424 (0x590), region = 56 }
 0x49f   : > { %v1964_v57 = vpop.eup %1963 }
 0x4a0   : > { %v1388_v4 = vmul.f32 %v1964_v57, %v1383_v29 }
 0x4a2   : > { %v1389_v5 = vsel %vm1277_vm3, %v1388_v4, %v2797_v44  ;;  %v1726_v44 = vpack.c.bf16 (!%p1653_p8), %v1406_v14, %v1405_v13 }
 0x4a3   : > { %1392 = vst [vmem:[#allocation2 + $0x8] sm:$0xff] %v1389_v5 }
 0x4a4   : > { %1727 = vmatprep.subr.bf16.mxu0 %v1726_v44 }
 0x4a5   : > { %1729 = vmatpush3.bf16.msra.mxu0 %v1726_v44 }
 0x4a6   : > { %1731 = vmatprep.subr.bf16.mxu0 %v1730_v17 }
 0x4a9   : > { %1733 = vmatpush3.bf16.msra.mxu0 %v1730_v17 }
 0x4aa   : > { %1735 = vmatprep.subr.bf16.mxu0 %v1734_v19 }
 0x4ad   : > { %1737 = vmatpush3.bf16.msra.mxu0 %v1734_v19 }
 0x4ae   : > { %1739 = vmatprep.subr.bf16.mxu0 %v1738_v20 }
 0x4b1   : > { %1741 = vmatpush3.bf16.msra.mxu0 %v1738_v20 }
 0x4b2   : > { %1743 = vmatprep.subr.bf16.mxu0 %v1742_v23 }
 0x4b5   : > { %1745 = vmatpush3.bf16.msra.mxu0 %v1742_v23 }
 0x4b8   : > { %1712 = vmatmul.mubr.f32.vlgmr.msra.gmra.mrb[0].mxu0 %v1389_v5 }
 0x58b   : > { %v1713_v25 = vpop.f32.mrb[0].mxu0 }
 0x58c   : > { %v1494_v26 = vadd.f32 %v1713_v25, %v1654_v24  ;;  %v1488_v28 = vpop.f32.mrb[1].mxu0 }
 0x58d   : > { %v1489_v30 = vadd.f32 %v1654_v24, %v1488_v28 }
 0x58e   : > { %1498 = vst [vmem:[#allocation10 + $0x8] sm:$0xff] %v1494_v26 }
 0x58f   : > { %1497 = vst [vmem:[#allocation10] sm:$0xff] %v1489_v30 }
 0x590 PF: > { %p2822_p10 = scmp.eq.s32.totalorder %s1594_s21, 2  ;;  %s2176_s28 = smov [#allocation10]  }
 0x591   : > { %s1508_s29 = sshll.u32 %s2176_s28, 4  ;;  %s1509_s29 = int_to_ptr.vmem [resolvable:$true] %s1508_s29 }
 0x592   : > { %s2081_s26 = scalar_lea.vmem %s1509_s29, 256  ;;  %p2088_p3 = scmp.lt.s32.totalorder %s1509_s29, %s1509_s29 }
 0x593   : > { %p2082_p11 = scmp.ne.s32.totalorder %s1509_s29, %s2081_s26  ;;  %p2089_p12 = scmp.lt.s32.totalorder %s2081_s26, %s2081_s26 }
 0x595   : > { %p2083_p13 = pnand %p2082_p11, %p2822_p10  ;;  %p2090_p0 = por %p2089_p12, %p2088_p3 }
 0x597   : > { %p2084_p2 = pneg %p2083_p13 }
 0x599   : > { %p2091_p6 = pnand %p2090_p0, %p2084_p2 }
 0x59b   : > { %2094 = shalt.err (!%p2091_p6)
}
 0x59c   : > { %s2095_s21 = scalar_lea.hbm %s2870_s4, 256 }
 0x59d   : > { %p2096_p7 = scmp.ne.s32.totalorder %s2870_s4, %s2095_s21  ;;  %p2101_p4 = scmp.lt.u32.totalorder %s2095_s21, %s2870_s4 }
 0x59f   : > { %p2097_p9 = pnand %p2096_p7, %p2822_p10 }
 0x5a1   : > { %p2098_p1 = pneg %p2097_p9 }
 0x5a3   : > { %p2103_p5 = pnand %p2101_p4, %p2098_p1 }
 0x5a5   : > { %2106 = shalt.err (!%p2103_p5)
}
 0x5a6   : > { %s2177_s23 = smov 128   ;;  %s2178_s24 = smov 8  }
 0x5a7   : > { %1757 = dma.vmem_to_hbm [thread:$0]  (%p2822_p10), %s1509_s29, 256, %s2870_s4, [#allocation6], %s2177_s23, %s2177_s23, %s2178_s24  }
 0x5a8   : > { %2140 = dma.done.wait (%p2822_p10), [#allocation6], 256  }
 0x5a9   : > { %2142 = vsyncadd (%p2822_p10), [#allocation6], 4294967040 }
 0x5aa PF: > { %s19_s20 = sadd.s32 1, %s2165_s20   ;;  %s2886_s8 = smov %s2893_s15 }
 0x5ab   : > { %p16_p8 = scmp.ge.s32.totalorder %s19_s20, 5   ;;  %s2887_s15 = smov %s2149_s16 }
 0x5ac   : > { %s2888_s16 = smov %s2153_s17  ;;  %s2889_s17 = smov %s2325_s6 }
 0x5ad   : > { %s2890_s18 = smov %s2161_s19  ;;  %s2891_s19 = smov %s2886_s8 }
 0x5ae   :  { %18 = sbr.rel (!%p16_p8) target bundleno = 6 (0x6), region = 93 }
 0x5b5   :  { %1524 = vsyncpa [#allocation5], 1 }
 0x5b6   :  { %1526 = vsyncpa [#allocation5 + $0x1], 1 }
 0x5b7   :  { %1527 = vsyncpa [#allocation8], 1 }
 0x5b8   :  { %1528 = vsyncpa [#allocation6], 1 }
 0x5b9   :  { %1530 = vsyncpa [#allocation6 + $0x1], 1 }

</bundles_post_ra>
